<compile_context>
chip_gen: v7x
topology: tpu7x:2x2x1
jax: 0.10.0
libtpu: 0.0.40
codegen_flags: <defaults>
</compile_context>

<pallas_src>
import functools

import jax
import jax.numpy as jnp
from jax.experimental import pallas as pl
from jax.experimental.pallas import tpu as pltpu


def _make_kernel(m_true):
    """Kernel closure over the true reduction length (H*W*N columns)."""
    inv_m = 1.0 / float(m_true)

    def kernel(x_ref, w_ref, gb_ref, o_ref):
        # x_ref  : (Cin, M)        channel-major activations
        # w_ref  : (blk_co, Cin)   slice of the 1x1 conv weight
        # gb_ref : (blk_co, 2)     packed BN affine [gamma | beta]
        # o_ref  : (blk_co, M)

        # relu47
        x = jnp.maximum(x_ref[...], 0.0)

        # conv2d47: 1x1 conv in channel-major form == single MXU matmul
        y = jnp.dot(w_ref[...], x, preferred_element_type=jnp.float32)

        # batchnorm2d48: training-mode batch statistics (single pass).
        s1 = jnp.sum(y, axis=-1, keepdims=True)
        s2 = jnp.sum(y * y, axis=-1, keepdims=True)
        mean = s1 * inv_m
        var = jnp.maximum(s2 * inv_m - mean * mean, 0.0)   # biased var, clamped
        inv_std = jax.lax.rsqrt(var + 1e-5)

        # Fold affine: out = (y - mean) * inv_std * gamma + beta
        gb = gb_ref[...]
        scale = gb[:, 0:1] * inv_std
        shift = gb[:, 1:2] - mean * scale

        # relu48
        o_ref[...] = jnp.maximum(y * scale + shift, 0.0).astype(o_ref.dtype)

    return kernel


def _default_n_blk(cout):
    """2-way channel split only on 2-TensorCore chips (v7x); 1 elsewhere."""
    try:
        kind = jax.devices()[0].device_kind.lower()
    except Exception:
        return 1
    two_tc = "v7" in kind
    if two_tc and cout % 2 == 0 and (cout // 2) % 8 == 0:
        return 2
    return 1


@functools.partial(jax.jit, static_argnames=("n_blk",))
def _fused_impl(x_nchw, conv_w, gamma, beta, n_blk):
    n, cin, h, w = x_nchw.shape
    cout = conv_w.shape[0]
    m = n * h * w

    # Channel-major: free reshape for N == 1 (the module's shape); only falls
    # back to a transpose for N > 1.
    if n == 1:
        x2d = x_nchw.reshape(cin, m)
    else:
        x2d = jnp.transpose(x_nchw, (1, 0, 2, 3)).reshape(cin, m)

    w_mat = conv_w.reshape(cout, cin)                      # (Cout, Cin)
    gb = jnp.stack([gamma, beta], axis=1)                  # (Cout, 2)

    blk_co = cout // n_blk

    flops = 2 * cout * cin * m + 8 * cout * m
    bytes_accessed = 4 * (cin * m + cout * cin + cout * m + 2 * cout)

    out2d = pl.pallas_call(
        _make_kernel(m),
        out_shape=jax.ShapeDtypeStruct((cout, m), jnp.float32),
        grid=(n_blk,),
        in_specs=[
            pl.BlockSpec((cin, m), lambda i: (0, 0)),      # x: full, grid-invariant
            pl.BlockSpec((blk_co, cin), lambda i: (i, 0)), # weight slice
            pl.BlockSpec((blk_co, 2), lambda i: (i, 0)),   # packed gamma/beta
        ],
        out_specs=pl.BlockSpec((blk_co, m), lambda i: (i, 0)),
        compiler_params=pltpu.CompilerParams(
            dimension_semantics=("parallel",),
            vmem_limit_bytes=8 * 1024 * 1024,
        ),
        cost_estimate=pl.CostEstimate(
            flops=flops, transcendentals=cout, bytes_accessed=bytes_accessed),
    )(x2d, w_mat, gb)

    if n == 1:
        return out2d.reshape(1, cout, h, w)
    return jnp.transpose(out2d.reshape(cout, n, h, w), (1, 0, 2, 3))


def fused_relu_conv_bn_relu(x_nchw, conv_w, gamma, beta):
    """x_nchw: (N, 576, H, W) f32, conv_w: (192, 576, 1, 1), gamma/beta: (192,)."""
    n_blk = _default_n_blk(conv_w.shape[0])
    return _fused_impl(x_nchw, conv_w, gamma, beta, n_blk)


def reference(x_nchw, conv_w, gamma, beta):
    """Pure-JAX reference with identical semantics (sanity check)."""
    n, cin, h, w = x_nchw.shape
    cout = conv_w.shape[0]
    x = jnp.maximum(x_nchw, 0.0)
    x_flat = jnp.transpose(x, (0, 2, 3, 1)).reshape(n * h * w, cin)
    y = x_flat @ jnp.transpose(conv_w.reshape(cout, cin))
    mean = jnp.mean(y, axis=0, keepdims=True)
    var = jnp.mean((y - mean) ** 2, axis=0, keepdims=True)
    y_hat = (y - mean) / jnp.sqrt(var + 1e-5)
    out = jnp.maximum(y_hat * gamma[None, :] + beta[None, :], 0.0)
    return jnp.transpose(out.reshape(n, h, w, cout), (0, 3, 1, 2))


if __name__ == "__main__":
    key = jax.random.PRNGKey(0)
    k_x, k_w, k_g, k_b = jax.random.split(key, 4)

    # Shapes implied by the module: input (1, 576, 14, 14), conv 576 -> 192.
    N, C_IN, H, W = 1, 576, 14, 14
    C_OUT = 192

    x = jax.random.normal(k_x, (N, C_IN, H, W), dtype=jnp.float32)
    conv_w = jax.random.normal(k_w, (C_OUT, C_IN, 1, 1), dtype=jnp.float32) * (
        1.0 / jnp.sqrt(jnp.float32(C_IN)))
    gamma = 1.0 + 0.1 * jax.random.normal(k_g, (C_OUT,), dtype=jnp.float32)
    beta = 0.1 * jax.random.normal(k_b, (C_OUT,), dtype=jnp.float32)

    out = jax.block_until_ready(fused_relu_conv_bn_relu(x, conv_w, gamma, beta))
    ref = jax.block_until_ready(reference(x, conv_w, gamma, beta))

    assert out.shape == (N, C_OUT, H, W), out.shape
    assert jnp.allclose(out, ref, atol=1e-4, rtol=1e-4), (
        float(jnp.max(jnp.abs(out - ref))))

    # TODO(synk): BatchNorm running_mean/running_var momentum updates (training
    # side-effect buffers) are not emitted; forward output is unaffected.
    print("KERNEL_OK")
</pallas_src>

<mosaic_0001>
module attributes {stable_mosaic.version = 11 : i64} {
  func.func @kernel(%arg0: i32, %arg1: memref<576x196xf32, #tpu.memory_space<vmem>>, %arg2: memref<192x576xf32, #tpu.memory_space<vmem>>, %arg3: memref<192x2xf32, #tpu.memory_space<vmem>>, %arg4: memref<192x196xf32, #tpu.memory_space<vmem>>) attributes {dimension_semantics = [#tpu.dimension_semantics<parallel>], iteration_bounds = array<i64: 1>, scalar_prefetch = 0 : i64, scratch_operands = 0 : i64, tpu.core_type = #tpu.core_type<tc>, window_params = [{pipeline_mode = #tpu.pipeline_mode<synchronous>, transform_indices = @transform_0, window_bounds = array<i64: 576, 196>}, {transform_indices = @transform_1, window_bounds = array<i64: 192, 576>}, {transform_indices = @transform_2, window_bounds = array<i64: 192, 2>}, {transform_indices = @transform_3, window_bounds = array<i64: 192, 196>}]} {
    %c0 = arith.constant 0 : index
    %c0_0 = arith.constant 0 : index
    %0 = vector.load %arg1[%c0, %c0_0] : memref<576x196xf32, #tpu.memory_space<vmem>>, vector<576x196xf32>
    %cst = arith.constant 0.000000e+00 : f32
    %1 = vector.broadcast %cst : f32 to vector<576x196xf32>
    %2 = arith.maximumf %0, %1 : vector<576x196xf32>
    %c0_1 = arith.constant 0 : index
    %c0_2 = arith.constant 0 : index
    %3 = vector.load %arg2[%c0_1, %c0_2] : memref<192x576xf32, #tpu.memory_space<vmem>>, vector<192x576xf32>
    %cst_3 = arith.constant dense<0.000000e+00> : vector<192x196xf32>
    %4 = tpu.matmul %3, %2, %cst_3 {dimension_numbers = #tpu.dot_dimension_numbers<[1], [0], [0], [1], [0, 0, 1, 1], [], []>} : vector<192x576xf32>, vector<576x196xf32>, vector<192x196xf32> -> vector<192x196xf32>
    %cst_4 = arith.constant dense<0.000000e+00> : vector<192xf32>
    %5 = vector.multi_reduction <add>, %4, %cst_4 [1] : vector<192x196xf32> to vector<192xf32>
    %6 = vector.shape_cast %5 : vector<192xf32> to vector<192x1xf32>
    %7 = arith.mulf %4, %4 : vector<192x196xf32>
    %cst_5 = arith.constant dense<0.000000e+00> : vector<192xf32>
    %8 = vector.multi_reduction <add>, %7, %cst_5 [1] : vector<192x196xf32> to vector<192xf32>
    %9 = vector.shape_cast %8 : vector<192xf32> to vector<192x1xf32>
    %cst_6 = arith.constant 0.00510204071 : f32
    %10 = vector.broadcast %cst_6 : f32 to vector<192x1xf32>
    %11 = arith.mulf %6, %10 : vector<192x1xf32>
    %cst_7 = arith.constant 0.00510204071 : f32
    %12 = vector.broadcast %cst_7 : f32 to vector<192x1xf32>
    %13 = arith.mulf %9, %12 : vector<192x1xf32>
    %14 = arith.mulf %11, %11 : vector<192x1xf32>
    %15 = arith.subf %13, %14 : vector<192x1xf32>
    %cst_8 = arith.constant 0.000000e+00 : f32
    %16 = vector.broadcast %cst_8 : f32 to vector<192x1xf32>
    %17 = arith.maximumf %15, %16 : vector<192x1xf32>
    %cst_9 = arith.constant 9.99999974E-6 : f32
    %18 = vector.broadcast %cst_9 : f32 to vector<192x1xf32>
    %19 = arith.addf %17, %18 : vector<192x1xf32>
    %20 = math.rsqrt %19 : vector<192x1xf32>
    %c0_10 = arith.constant 0 : index
    %c0_11 = arith.constant 0 : index
    %21 = vector.load %arg3[%c0_10, %c0_11] : memref<192x2xf32, #tpu.memory_space<vmem>>, vector<192x2xf32>
    %22 = vector.extract_strided_slice %21 {offsets = [0, 0], sizes = [192, 1], strides = [1, 1]} : vector<192x2xf32> to vector<192x1xf32>
    %23 = arith.mulf %22, %20 : vector<192x1xf32>
    %24 = vector.extract_strided_slice %21 {offsets = [0, 1], sizes = [192, 1], strides = [1, 1]} : vector<192x2xf32> to vector<192x1xf32>
    %25 = arith.mulf %11, %23 : vector<192x1xf32>
    %26 = arith.subf %24, %25 : vector<192x1xf32>
    %27 = vector.broadcast %23 : vector<192x1xf32> to vector<192x196xf32>
    %28 = arith.mulf %4, %27 : vector<192x196xf32>
    %29 = vector.broadcast %26 : vector<192x1xf32> to vector<192x196xf32>
    %30 = arith.addf %28, %29 : vector<192x196xf32>
    %cst_12 = arith.constant 0.000000e+00 : f32
    %31 = vector.broadcast %cst_12 : f32 to vector<192x196xf32>
    %32 = arith.maximumf %30, %31 : vector<192x196xf32>
    %c0_13 = arith.constant 0 : index
    %c0_14 = arith.constant 0 : index
    %33 = vector.load %arg4[%c0_13, %c0_14] : memref<192x196xf32, #tpu.memory_space<vmem>>, vector<192x196xf32>
    tpu.vector_store %arg4[%c0_13, %c0_14], %32 {strides = array<i32>} : memref<192x196xf32, #tpu.memory_space<vmem>>, vector<192x196xf32>,
    return
  }
  func.func @transform_0(%arg0: i32) -> (i32, i32) {
    %c0_i32 = arith.constant 0 : i32
    %c0_i32_0 = arith.constant 0 : i32
    %c0_i32_1 = arith.constant 0 : i32
    return %c0_i32, %c0_i32_0 : i32, i32
  }
  func.func @transform_1(%arg0: i32) -> (i32, i32) {
    %c0_i32 = arith.constant 0 : i32
    %c0_i32_0 = arith.constant 0 : i32
    return %arg0, %c0_i32 : i32, i32
  }
  func.func @transform_2(%arg0: i32) -> (i32, i32) {
    %c0_i32 = arith.constant 0 : i32
    %c0_i32_0 = arith.constant 0 : i32
    return %arg0, %c0_i32 : i32, i32
  }
  func.func @transform_3(%arg0: i32) -> (i32, i32) {
    %c0_i32 = arith.constant 0 : i32
    %c0_i32_0 = arith.constant 0 : i32
    return %arg0, %c0_i32 : i32, i32
  }
}

</mosaic_0001>

<bundles_post_ra>
// kernel: _fused_impl.1
= control target key start
LH: loop header
LB: loop body
LE: loop exit
PB: predicated region body
PF: predicated region fallthrough
CT: control target
= control target key end

     0   :  { %vm422_vm0 = vcmask 523264   ;;  %vm1122_vm1 = vcmask 556032   ;;  %s2513_s22 = smov 1   ;;  %s4442_s0 = inlined_call_operand.vmem [shape: f32[576,196], index: 0, kind: input, shape index: {}]   ;;  %s4443_s1 = inlined_call_operand.vmem [shape: f32[192,576], index: 1, kind: input, shape index: {}]   ;;  %s4444_s2 = inlined_call_operand.vmem [shape: f32[192,2], index: 2, kind: input, shape index: {}]   ;;  %s4445_s3 = inlined_call_operand.vmem [shape: f32[192,196], index: 3, kind: output, shape index: {}]  }
   0x1   :  { %v15_v0 = vld [vmem:[%s4442_s0 + $0x8] sm:$0xff]  ;;  %v17_v1 = vld [vmem:[%s4442_s0 + $0x18] sm:$0xff]  ;;  %v14_v7 = vld [vmem:[%s4442_s0] sm:$0xff] }
   0x2   :  { %v79_v2 = vld [vmem:[%s4442_s0 + $0x208] sm:$0xff]  ;;  %v159_v3 = vmax.f32 %v15_v0, 0.0  ;;  %v161_v4 = vmax.f32 %v17_v1, 0.0  ;;  %v81_v5 = vld [vmem:[%s4442_s0 + $0x218] sm:$0xff]  ;;  %v16_v8 = vld [vmem:[%s4442_s0 + $0x10] sm:$0xff]  ;;  %v158_v10 = vmax.f32 %v14_v7, 0.0 }
   0x3   :  { %v223_v6 = vmax.f32 %v79_v2, 0.0  ;;  %v225_v9 = vmax.f32 %v81_v5, 0.0  ;;  %v160_v11 = vmax.f32 %v16_v8, 0.0  ;;  %v78_v12 = vld [vmem:[%s4442_s0 + $0x200] sm:$0xff]  ;;  %v80_v13 = vld [vmem:[%s4442_s0 + $0x210] sm:$0xff]  ;;  %v19_v14 = vld [vmem:[%s4442_s0 + $0x28] sm:$0xff] }
   0x4   :  { %v2183_v15 = vpack.c.bf16 %v161_v4, %v159_v3  ;;  %v222_v16 = vmax.f32 %v78_v12, 0.0  ;;  %v224_v17 = vmax.f32 %v80_v13, 0.0  ;;  %v21_v18 = vld [vmem:[%s4442_s0 + $0x38] sm:$0xff]  ;;  %v163_v19 = vmax.f32 %v19_v14, 0.0  ;;  %v83_v20 = vld [vmem:[%s4442_s0 + $0x228] sm:$0xff]  ;;  %v18_v26 = vld [vmem:[%s4442_s0 + $0x20] sm:$0xff] }
   0x5   :  { %v85_v21 = vld [vmem:[%s4442_s0 + $0x238] sm:$0xff]  ;;  %v2571_v22 = vpack.c.bf16 %v225_v9, %v223_v6  ;;  %v2185_v23 = vpack.c.bf16 %v160_v11, %v158_v10  ;;  %v165_v24 = vmax.f32 %v21_v18, 0.0  ;;  %v227_v25 = vmax.f32 %v83_v20, 0.0  ;;  %v20_v27 = vld [vmem:[%s4442_s0 + $0x30] sm:$0xff]  ;;  %v82_v28 = vld [vmem:[%s4442_s0 + $0x220] sm:$0xff] }
   0x6   :  { %2184 = vmatprep.subr.bf16.mxu1 %v2183_v15  ;;  %v2582_v29 = vpack.c.bf16 %v224_v17, %v222_v16  ;;  %v229_v30 = vmax.f32 %v85_v21, 0.0  ;;  %v162_v31 = vmax.f32 %v18_v26, 0.0  ;;  %v164_v32 = vmax.f32 %v20_v27, 0.0  ;;  %v84_v33 = vld [vmem:[%s4442_s0 + $0x230] sm:$0xff]  ;;  %v23_v34 = vld [vmem:[%s4442_s0 + $0x48] sm:$0xff]  ;;  %v25_v35 = vld [vmem:[%s4442_s0 + $0x58] sm:$0xff] }
   0x7   :  { %2248 = vmatprep.subr.bf16.mxu0 %v2571_v22  ;;  %2186 = vmatpush1.bf16.msra.mxu1 %v2185_v23  ;;  %v2187_v36 = vpack.c.bf16 %v165_v24, %v163_v19  ;;  %v226_v37 = vmax.f32 %v82_v28, 0.0  ;;  %v228_v38 = vmax.f32 %v84_v33, 0.0  ;;  %v167_v39 = vmax.f32 %v23_v34, 0.0  ;;  %v87_v40 = vld [vmem:[%s4442_s0 + $0x248] sm:$0xff]  ;;  %v89_v41 = vld [vmem:[%s4442_s0 + $0x258] sm:$0xff]  ;;  %v22_v42 = vld [vmem:[%s4442_s0 + $0x40] sm:$0xff] }
   0x8   :  { %2250 = vmatpush1.bf16.msra.mxu0 %v2582_v29  ;;  %v2604_v43 = vpack.c.bf16 %v229_v30, %v227_v25  ;;  %v2189_v44 = vpack.c.bf16 %v164_v32, %v162_v31  ;;  %v169_v45 = vmax.f32 %v25_v35, 0.0  ;;  %v231_v46 = vmax.f32 %v87_v40, 0.0  ;;  %v24_v47 = vld [vmem:[%s4442_s0 + $0x50] sm:$0xff]  ;;  %v86_v48 = vld [vmem:[%s4442_s0 + $0x240] sm:$0xff]  ;;  %v27_v54 = vld [vmem:[%s4442_s0 + $0x68] sm:$0xff] }
   0x9   :  { %v88_v49 = vld [vmem:[%s4442_s0 + $0x250] sm:$0xff]  ;;  %2188 = vmatprep.subr.bf16.mxu1 %v2187_v36  ;;  %v2615_v50 = vpack.c.bf16 %v228_v38, %v226_v37  ;;  %v233_v51 = vmax.f32 %v89_v41, 0.0  ;;  %v166_v52 = vmax.f32 %v22_v42, 0.0  ;;  %v168_v53 = vmax.f32 %v24_v47, 0.0  ;;  %v29_v55 = vld [vmem:[%s4442_s0 + $0x78] sm:$0xff]  ;;  %v91_v56 = vld [vmem:[%s4442_s0 + $0x268] sm:$0xff] }
   0xa   :  { %2252 = vmatprep.subr.bf16.mxu0 %v2604_v43  ;;  %v2191_v57 = vpack.c.bf16 %v169_v45, %v167_v39  ;;  %v230_v58 = vmax.f32 %v86_v48, 0.0  ;;  %v232_v59 = vmax.f32 %v88_v49, 0.0  ;;  %v171_v60 = vmax.f32 %v27_v54, 0.0  ;;  %v93_v61 = vld [vmem:[%s4442_s0 + $0x278] sm:$0xff]  ;;  %v26_v62 = vld [vmem:[%s4442_s0 + $0x60] sm:$0xff]  ;;  %v28_v63 = vld [vmem:[%s4442_s0 + $0x70] sm:$0xff] }
   0xb   :  { %2190 = vmatpush1.bf16.msra.mxu1 %v2189_v44  ;;  %v2636_v0 = vpack.c.bf16 %v233_v51, %v231_v46  ;;  %v2193_v1 = vpack.c.bf16 %v168_v53, %v166_v52  ;;  %v173_v2 = vmax.f32 %v29_v55, 0.0  ;;  %v235_v3 = vmax.f32 %v91_v56, 0.0  ;;  %v90_v4 = vld [vmem:[%s4442_s0 + $0x260] sm:$0xff]  ;;  %v92_v5 = vld [vmem:[%s4442_s0 + $0x270] sm:$0xff]  ;;  %v31_v6 = vld [vmem:[%s4442_s0 + $0x88] sm:$0xff] }
   0xc   :  { %2254 = vmatpush1.bf16.msra.mxu0 %v2615_v50  ;;  %2192 = vmatprep.subr.bf16.mxu1 %v2191_v57  ;;  %v2648_v7 = vpack.c.bf16 %v232_v59, %v230_v58  ;;  %v237_v8 = vmax.f32 %v93_v61, 0.0  ;;  %v170_v9 = vmax.f32 %v26_v62, 0.0  ;;  %v172_v10 = vmax.f32 %v28_v63, 0.0  ;;  %v33_v11 = vld [vmem:[%s4442_s0 + $0x98] sm:$0xff]  ;;  %v95_v12 = vld [vmem:[%s4442_s0 + $0x288] sm:$0xff]  ;;  %v30_v18 = vld [vmem:[%s4442_s0 + $0x80] sm:$0xff] }
   0xd   :  { %v97_v13 = vld [vmem:[%s4442_s0 + $0x298] sm:$0xff]  ;;  %2256 = vmatprep.subr.bf16.mxu0 %v2636_v0  ;;  %v2195_v14 = vpack.c.bf16 %v173_v2, %v171_v60  ;;  %v234_v15 = vmax.f32 %v90_v4, 0.0  ;;  %v236_v16 = vmax.f32 %v92_v5, 0.0  ;;  %v175_v17 = vmax.f32 %v31_v6, 0.0  ;;  %v32_v19 = vld [vmem:[%s4442_s0 + $0x90] sm:$0xff]  ;;  %v94_v20 = vld [vmem:[%s4442_s0 + $0x280] sm:$0xff] }
   0xe   :  { %v2669_v21 = vpack.c.bf16 %v237_v8, %v235_v3  ;;  %v2197_v23 = vpack.c.bf16 %v172_v10, %v170_v9  ;;  %v177_v24 = vmax.f32 %v33_v11, 0.0  ;;  %v239_v25 = vmax.f32 %v95_v12, 0.0  ;;  %v96_v26 = vld [vmem:[%s4442_s0 + $0x290] sm:$0xff]  ;;  %v35_v27 = vld [vmem:[%s4442_s0 + $0xa8] sm:$0xff]  ;;  %v37_v28 = vld [vmem:[%s4442_s0 + $0xb8] sm:$0xff] }
   0xf   :  { %2194 = vmatpush1.bf16.msra.mxu1 %v2193_v1  ;;  %v2680_v30 = vpack.c.bf16 %v236_v16, %v234_v15  ;;  %v241_v31 = vmax.f32 %v97_v13, 0.0  ;;  %v174_v32 = vmax.f32 %v30_v18, 0.0  ;;  %v176_v33 = vmax.f32 %v32_v19, 0.0  ;;  %v99_v34 = vld [vmem:[%s4442_s0 + $0x2a8] sm:$0xff]  ;;  %v101_v35 = vld [vmem:[%s4442_s0 + $0x2b8] sm:$0xff]  ;;  %v34_v36 = vld [vmem:[%s4442_s0 + $0xa0] sm:$0xff] }
  0x10   :  { %2258 = vmatpush1.bf16.msra.mxu0 %v2648_v7  ;;  %2196 = vmatprep.subr.bf16.mxu1 %v2195_v14  ;;  %v2199_v37 = vpack.c.bf16 %v177_v24, %v175_v17  ;;  %v238_v38 = vmax.f32 %v94_v20, 0.0  ;;  %v240_v39 = vmax.f32 %v96_v26, 0.0  ;;  %v179_v40 = vmax.f32 %v35_v27, 0.0  ;;  %v36_v41 = vld [vmem:[%s4442_s0 + $0xb0] sm:$0xff]  ;;  %v98_v42 = vld [vmem:[%s4442_s0 + $0x2a0] sm:$0xff]  ;;  %v39_v48 = vld [vmem:[%s4442_s0 + $0xc8] sm:$0xff] }
  0x11   :  { %v100_v44 = vld [vmem:[%s4442_s0 + $0x2b0] sm:$0xff]  ;;  %2260 = vmatprep.subr.bf16.mxu0 %v2669_v21  ;;  %v2702_v45 = vpack.c.bf16 %v241_v31, %v239_v25  ;;  %v181_v46 = vmax.f32 %v37_v28, 0.0  ;;  %v243_v47 = vmax.f32 %v99_v34, 0.0  ;;  %v41_v49 = vld [vmem:[%s4442_s0 + $0xd8] sm:$0xff]  ;;  %v2201_v51 = vpack.c.bf16 %v176_v33, %v174_v32  ;;  %v103_v53 = vld [vmem:[%s4442_s0 + $0x2c8] sm:$0xff] }
  0x12   :  { %v245_v52 = vmax.f32 %v101_v35, 0.0  ;;  %v105_v54 = vld [vmem:[%s4442_s0 + $0x2d8] sm:$0xff]  ;;  %v178_v55 = vmax.f32 %v34_v36, 0.0  ;;  %v180_v56 = vmax.f32 %v36_v41, 0.0  ;;  %v242_v57 = vmax.f32 %v98_v42, 0.0  ;;  %v38_v59 = vld [vmem:[%s4442_s0 + $0xc0] sm:$0xff] }
  0x13   :  { %2198 = vmatpush1.bf16.msra.mxu1 %v2197_v23  ;;  %v244_v58 = vmax.f32 %v100_v44, 0.0  ;;  %v40_v60 = vld [vmem:[%s4442_s0 + $0xd0] sm:$0xff]  ;;  %v2723_v61 = vpack.c.bf16 %v240_v39, %v238_v38  ;;  %v2203_v62 = vpack.c.bf16 %v181_v46, %v179_v40  ;;  %v183_v63 = vmax.f32 %v39_v48, 0.0  ;;  %v102_v2 = vld [vmem:[%s4442_s0 + $0x2c0] sm:$0xff]  ;;  %v43_v8 = vld [vmem:[%s4442_s0 + $0xe8] sm:$0xff] }
  0x14   :  { %2262 = vmatpush1.bf16.msra.mxu0 %v2680_v30  ;;  %2200 = vmatprep.subr.bf16.mxu1 %v2199_v37  ;;  %v185_v1 = vmax.f32 %v41_v49, 0.0  ;;  %v2729_v3 = vpack.c.bf16 %v245_v52, %v243_v47  ;;  %v247_v4 = vmax.f32 %v103_v53, 0.0  ;;  %v249_v5 = vmax.f32 %v105_v54, 0.0  ;;  %v104_v6 = vld [vmem:[%s4442_s0 + $0x2d0] sm:$0xff]  ;;  %v45_v9 = vld [vmem:[%s4442_s0 + $0xf8] sm:$0xff]  ;;  %v107_v12 = vld [vmem:[%s4442_s0 + $0x2e8] sm:$0xff] }
  0x15   :  { %2264 = vmatprep.subr.bf16.mxu0 %v2702_v45  ;;  %v182_v10 = vmax.f32 %v38_v59, 0.0  ;;  %v184_v11 = vmax.f32 %v40_v60, 0.0  ;;  %v109_v13 = vld [vmem:[%s4442_s0 + $0x2f8] sm:$0xff]  ;;  %v2205_v14 = vpack.c.bf16 %v180_v56, %v178_v55  ;;  %v2746_v15 = vpack.c.bf16 %v244_v58, %v242_v57  ;;  %v42_v17 = vld [vmem:[%s4442_s0 + $0xe0] sm:$0xff]  ;;  %v44_v18 = vld [vmem:[%s4442_s0 + $0xf0] sm:$0xff] }
  0x16   :  { %v246_v16 = vmax.f32 %v102_v2, 0.0  ;;  %v106_v19 = vld [vmem:[%s4442_s0 + $0x2e0] sm:$0xff]  ;;  %v2207_v20 = vpack.c.bf16 %v185_v1, %v183_v63  ;;  %v248_v23 = vmax.f32 %v104_v6, 0.0  ;;  %v187_v24 = vmax.f32 %v43_v8, 0.0  ;;  %v108_v26 = vld [vmem:[%s4442_s0 + $0x2f0] sm:$0xff]  ;;  %v47_v27 = vld [vmem:[%s4442_s0 + $0x108] sm:$0xff] }
  0x17   :  { %2202 = vmatpush1.bf16.msra.mxu1 %v2201_v51  ;;  %v189_v25 = vmax.f32 %v45_v9, 0.0  ;;  %v49_v28 = vld [vmem:[%s4442_s0 + $0x118] sm:$0xff]  ;;  %v2768_v31 = vpack.c.bf16 %v249_v5, %v247_v4  ;;  %v251_v32 = vmax.f32 %v107_v12, 0.0  ;;  %v253_v33 = vmax.f32 %v109_v13, 0.0  ;;  %v111_v37 = vld [vmem:[%s4442_s0 + $0x308] sm:$0xff]  ;;  %v46_v44 = vld [vmem:[%s4442_s0 + $0x100] sm:$0xff] }
  0x18   :  { %2266 = vmatpush1.bf16.msra.mxu0 %v2723_v61  ;;  %2204 = vmatprep.subr.bf16.mxu1 %v2203_v62  ;;  %v2209_v34 = vpack.c.bf16 %v184_v11, %v182_v10  ;;  %v186_v35 = vmax.f32 %v42_v17, 0.0  ;;  %v188_v36 = vmax.f32 %v44_v18, 0.0  ;;  %v113_v38 = vld [vmem:[%s4442_s0 + $0x318] sm:$0xff]  ;;  %v250_v39 = vmax.f32 %v106_v19, 0.0  ;;  %v48_v46 = vld [vmem:[%s4442_s0 + $0x110] sm:$0xff]  ;;  %v110_v49 = vld [vmem:[%s4442_s0 + $0x300] sm:$0xff] }
  0x19   :  { %2268 = vmatprep.subr.bf16.mxu0 %v2729_v3  ;;  %v252_v40 = vmax.f32 %v108_v26, 0.0  ;;  %v191_v41 = vmax.f32 %v47_v27, 0.0  ;;  %v193_v42 = vmax.f32 %v49_v28, 0.0  ;;  %v2783_v47 = vpack.c.bf16 %v248_v23, %v246_v16  ;;  %v112_v54 = vld [vmem:[%s4442_s0 + $0x310] sm:$0xff]  ;;  %v51_v55 = vld [vmem:[%s4442_s0 + $0x128] sm:$0xff]  ;;  %v53_v56 = vld [vmem:[%s4442_s0 + $0x138] sm:$0xff] }
  0x1a   :  { %v2211_v48 = vpack.c.bf16 %v189_v25, %v187_v24  ;;  %v2789_v51 = vpack.c.bf16 %v253_v33, %v251_v32  ;;  %v255_v52 = vmax.f32 %v111_v37, 0.0  ;;  %v257_v53 = vmax.f32 %v113_v38, 0.0  ;;  %v115_v59 = vld [vmem:[%s4442_s0 + $0x328] sm:$0xff]  ;;  %v117_v60 = vld [vmem:[%s4442_s0 + $0x338] sm:$0xff]  ;;  %v50_v62 = vld [vmem:[%s4442_s0 + $0x120] sm:$0xff] }
  0x1b   :  { %2206 = vmatpush1.bf16.msra.mxu1 %v2205_v14  ;;  %v190_v57 = vmax.f32 %v46_v44, 0.0  ;;  %v192_v58 = vmax.f32 %v48_v46, 0.0  ;;  %v2213_v63 = vpack.c.bf16 %v188_v36, %v186_v35  ;;  %v2809_v1 = vpack.c.bf16 %v252_v40, %v250_v39  ;;  %v52_v4 = vld [vmem:[%s4442_s0 + $0x130] sm:$0xff]  ;;  %v114_v5 = vld [vmem:[%s4442_s0 + $0x320] sm:$0xff]  ;;  %v55_v12 = vld [vmem:[%s4442_s0 + $0x148] sm:$0xff] }
  0x1c   :  { %2270 = vmatpush1.bf16.msra.mxu0 %v2746_v15  ;;  %2208 = vmatprep.subr.bf16.mxu1 %v2207_v20  ;;  %v2215_v2 = vpack.c.bf16 %v193_v42, %v191_v41  ;;  %v116_v6 = vld [vmem:[%s4442_s0 + $0x330] sm:$0xff]  ;;  %v254_v8 = vmax.f32 %v110_v49, 0.0  ;;  %v256_v9 = vmax.f32 %v112_v54, 0.0  ;;  %v195_v10 = vmax.f32 %v51_v55, 0.0  ;;  %v57_v13 = vld [vmem:[%s4442_s0 + $0x158] sm:$0xff]  ;;  %v119_v23 = vld [vmem:[%s4442_s0 + $0x348] sm:$0xff] }
  0x1d   :  { %2272 = vmatprep.subr.bf16.mxu0 %v2768_v31  ;;  %v197_v11 = vmax.f32 %v53_v56, 0.0  ;;  %v2828_v14 = vpack.c.bf16 %v257_v53, %v255_v52  ;;  %v259_v16 = vmax.f32 %v115_v59, 0.0  ;;  %v261_v17 = vmax.f32 %v117_v60, 0.0  ;;  %v121_v24 = vld [vmem:[%s4442_s0 + $0x358] sm:$0xff]  ;;  %v54_v32 = vld [vmem:[%s4442_s0 + $0x140] sm:$0xff]  ;;  %v56_v33 = vld [vmem:[%s4442_s0 + $0x150] sm:$0xff] }
  0x1e   :  { %v2217_v18 = vpack.c.bf16 %v192_v58, %v190_v57  ;;  %v194_v19 = vmax.f32 %v50_v62, 0.0  ;;  %v196_v20 = vmax.f32 %v52_v4, 0.0  ;;  %v258_v25 = vmax.f32 %v114_v5, 0.0  ;;  %v118_v36 = vld [vmem:[%s4442_s0 + $0x340] sm:$0xff]  ;;  %v120_v40 = vld [vmem:[%s4442_s0 + $0x350] sm:$0xff]  ;;  %v59_v41 = vld [vmem:[%s4442_s0 + $0x168] sm:$0xff] }
  0x1f   :  { %2210 = vmatpush1.bf16.msra.mxu1 %v2209_v34  ;;  %v260_v26 = vmax.f32 %v116_v6, 0.0  ;;  %v199_v27 = vmax.f32 %v55_v12, 0.0  ;;  %v201_v28 = vmax.f32 %v57_v13, 0.0  ;;  %v2843_v34 = vpack.c.bf16 %v256_v9, %v254_v8  ;;  %v61_v42 = vld [vmem:[%s4442_s0 + $0x178] sm:$0xff]  ;;  %v58_v52 = vld [vmem:[%s4442_s0 + $0x160] sm:$0xff]  ;;  %v60_v56 = vld [vmem:[%s4442_s0 + $0x170] sm:$0xff] }
  0x20   :  { %2274 = vmatpush1.bf16.msra.mxu0 %v2783_v47  ;;  %2212 = vmatprep.subr.bf16.mxu1 %v2211_v48  ;;  %v2219_v35 = vpack.c.bf16 %v197_v11, %v195_v10  ;;  %v2849_v37 = vpack.c.bf16 %v261_v17, %v259_v16  ;;  %v263_v38 = vmax.f32 %v119_v23, 0.0  ;;  %v265_v39 = vmax.f32 %v121_v24, 0.0  ;;  %v123_v48 = vld [vmem:[%s4442_s0 + $0x368] sm:$0xff]  ;;  %v125_v49 = vld [vmem:[%s4442_s0 + $0x378] sm:$0xff]  ;;  %v122_v57 = vld [vmem:[%s4442_s0 + $0x360] sm:$0xff] }
  0x21   :  { %2276 = vmatprep.subr.bf16.mxu0 %v2789_v51  ;;  %v198_v44 = vmax.f32 %v54_v32, 0.0  ;;  %v200_v46 = vmax.f32 %v56_v33, 0.0  ;;  %v2221_v53 = vpack.c.bf16 %v196_v20, %v194_v19  ;;  %v2869_v54 = vpack.c.bf16 %v260_v26, %v258_v25  ;;  %v124_v58 = vld [vmem:[%s4442_s0 + $0x370] sm:$0xff]  ;;  %v65_v4 = vld [vmem:[%s4442_s0 + $0x198] sm:$0xff]  ;;  %v127_v12 = vld [vmem:[%s4442_s0 + $0x388] sm:$0xff] }
  0x22   :  { %v2223_v55 = vpack.c.bf16 %v201_v28, %v199_v27  ;;  %v262_v59 = vmax.f32 %v118_v36, 0.0  ;;  %v264_v60 = vmax.f32 %v120_v40, 0.0  ;;  %v203_v62 = vmax.f32 %v59_v41, 0.0  ;;  %v129_v13 = vld [vmem:[%s4442_s0 + $0x398] sm:$0xff]  ;;  %v62_v16 = vld [vmem:[%s4442_s0 + $0x180] sm:$0xff]  ;;  %v64_v23 = vld [vmem:[%s4442_s0 + $0x190] sm:$0xff] }
  0x23   :  { %2214 = vmatpush1.bf16.msra.mxu1 %v2213_v63  ;;  %v205_v63 = vmax.f32 %v61_v42, 0.0  ;;  %v2888_v5 = vpack.c.bf16 %v265_v39, %v263_v38  ;;  %v267_v6 = vmax.f32 %v123_v48, 0.0  ;;  %v269_v8 = vmax.f32 %v125_v49, 0.0  ;;  %v303_v24 = vld [vmem:[%s4443_s1 + $0x8] sm:$0xff]  ;;  %v126_v27 = vld [vmem:[%s4442_s0 + $0x380] sm:$0xff]  ;;  %v305_v28 = vld [vmem:[%s4443_s1 + $0x18] sm:$0xff] }
  0x24   :  { %2278 = vmatpush1.bf16.msra.mxu0 %v2809_v1  ;;  %2216 = vmatprep.subr.bf16.mxu1 %v2215_v2  ;;  %v63_v2 = vld [vmem:[%s4442_s0 + $0x188] sm:$0xff]  ;;  %v2225_v9 = vpack.c.bf16 %v200_v46, %v198_v44  ;;  %v202_v10 = vmax.f32 %v58_v52, 0.0  ;;  %v204_v11 = vmax.f32 %v60_v56, 0.0  ;;  %v266_v17 = vmax.f32 %v122_v57, 0.0  ;;  %v128_v36 = vld [vmem:[%s4442_s0 + $0x390] sm:$0xff]  ;;  %v69_v39 = vld [vmem:[%s4442_s0 + $0x1b8] sm:$0xff] }
  0x25   :  { %2280 = vmatprep.subr.bf16.mxu0 %v2828_v14  ;;  %v207_v19 = vmax.f32 %v63_v2, 0.0  ;;  %v209_v20 = vmax.f32 %v65_v4, 0.0  ;;  %v2906_v25 = vpack.c.bf16 %v264_v60, %v262_v59  ;;  %v2227_v26 = vpack.c.bf16 %v205_v63, %v203_v62  ;;  %v67_v38 = vld [vmem:[%s4442_s0 + $0x1a8] sm:$0xff]  ;;  %559 = vmatprep.mubr.f32.mxu1 %v303_v24  ;;  %v133_v44 = vld [vmem:[%s4442_s0 + $0x3b8] sm:$0xff]  ;;  %v66_v46 = vld [vmem:[%s4442_s0 + $0x1a0] sm:$0xff] }
  0x26   :  { %v2915_v32 = vpack.c.bf16 %v269_v8, %v267_v6  ;;  %v271_v33 = vmax.f32 %v127_v12, 0.0  ;;  %v206_v40 = vmax.f32 %v62_v16, 0.0  ;;  %v208_v41 = vmax.f32 %v64_v23, 0.0  ;;  %v131_v42 = vld [vmem:[%s4442_s0 + $0x3a8] sm:$0xff]  ;;  %768 = vmatprep.mubr.f32.mxu0 %v305_v28  ;;  %v132_v56 = vld [vmem:[%s4442_s0 + $0x3b0] sm:$0xff]  ;;  %v73_v63 = vld [vmem:[%s4442_s0 + $0x1d8] sm:$0xff] }
  0x27   :  { %2218 = vmatpush1.bf16.msra.mxu1 %v2217_v18  ;;  %v268_v18 = vmax.f32 %v124_v58, 0.0  ;;  %v2229_v48 = vpack.c.bf16 %v204_v11, %v202_v10  ;;  %v2231_v52 = vpack.c.bf16 %v209_v20, %v207_v19  ;;  %v270_v57 = vmax.f32 %v126_v27, 0.0  ;;  %v71_v62 = vld [vmem:[%s4442_s0 + $0x1c8] sm:$0xff]  ;;  %v137_v12 = vld [vmem:[%s4442_s0 + $0x3d8] sm:$0xff]  ;;  %v70_v23 = vld [vmem:[%s4442_s0 + $0x1c0] sm:$0xff] }
  0x28   :  { %2282 = vmatpush1.bf16.msra.mxu0 %v2843_v34  ;;  %2220 = vmatprep.subr.bf16.mxu1 %v2219_v35  ;;  %v273_v35 = vmax.f32 %v129_v13, 0.0  ;;  %v272_v58 = vmax.f32 %v128_v36, 0.0  ;;  %v211_v59 = vmax.f32 %v67_v38, 0.0  ;;  %v213_v60 = vmax.f32 %v69_v39, 0.0  ;;  %v135_v11 = vld [vmem:[%s4442_s0 + $0x3c8] sm:$0xff]  ;;  %v72_v24 = vld [vmem:[%s4442_s0 + $0x1d0] sm:$0xff] }
  0x29   :  { %2284 = vmatprep.subr.bf16.mxu0 %v2849_v37  ;;  %v2935_v49 = vpack.c.bf16 %v268_v18, %v266_v17  ;;  %v275_v4 = vmax.f32 %v131_v42, 0.0  ;;  %v277_v6 = vmax.f32 %v133_v44, 0.0  ;;  %v2233_v8 = vpack.c.bf16 %v208_v41, %v206_v40  ;;  %v75_v36 = vld [vmem:[%s4442_s0 + $0x1e8] sm:$0xff]  ;;  %v77_v38 = vld [vmem:[%s4442_s0 + $0x1f8] sm:$0xff] }
  0x2a   :  { %v2954_v2 = vpack.c.bf16 %v273_v35, %v271_v33  ;;  %v276_v16 = vmax.f32 %v132_v56, 0.0  ;;  %v215_v17 = vmax.f32 %v71_v62, 0.0  ;;  %v217_v18 = vmax.f32 %v73_v63, 0.0  ;;  %v136_v35 = vld [vmem:[%s4442_s0 + $0x3d0] sm:$0xff]  ;;  %v139_v40 = vld [vmem:[%s4442_s0 + $0x3e8] sm:$0xff]  ;;  %v141_v41 = vld [vmem:[%s4442_s0 + $0x3f8] sm:$0xff] }
  0x2b   :  { %2222 = vmatpush1.bf16.msra.mxu1 %v2221_v53  ;;  %v68_v53 = vld [vmem:[%s4442_s0 + $0x1b0] sm:$0xff]  ;;  %v2963_v19 = vpack.c.bf16 %v272_v58, %v270_v57  ;;  %v2235_v20 = vpack.c.bf16 %v213_v60, %v211_v59  ;;  %v2975_v27 = vpack.c.bf16 %v277_v6, %v275_v4  ;;  %v279_v28 = vmax.f32 %v135_v11, 0.0  ;;  %v74_v57 = vld [vmem:[%s4442_s0 + $0x1e0] sm:$0xff]  ;;  %v143_v6 = vld [vmem:[%s4442_s0 + $0x408] sm:$0xff] }
  0x2c   :  { %2286 = vmatpush1.bf16.msra.mxu0 %v2869_v54  ;;  %2224 = vmatprep.subr.bf16.mxu1 %v2223_v55  ;;  %v130_v55 = vld [vmem:[%s4442_s0 + $0x3a0] sm:$0xff]  ;;  %v212_v10 = vmax.f32 %v68_v53, 0.0  ;;  %v281_v33 = vmax.f32 %v137_v12, 0.0  ;;  %v2239_v44 = vpack.c.bf16 %v217_v18, %v215_v17  ;;  %v280_v53 = vmax.f32 %v136_v35, 0.0  ;;  %v76_v58 = vld [vmem:[%s4442_s0 + $0x1f0] sm:$0xff] }
  0x2d   :  { %2288 = vmatprep.subr.bf16.mxu0 %v2888_v5  ;;  %v274_v13 = vmax.f32 %v130_v55, 0.0  ;;  %v219_v55 = vmax.f32 %v75_v36, 0.0  ;;  %v221_v56 = vmax.f32 %v77_v38, 0.0  ;;  %v283_v60 = vmax.f32 %v139_v40, 0.0  ;;  %v138_v63 = vld [vmem:[%s4442_s0 + $0x3e0] sm:$0xff]  ;;  %v140_v4 = vld [vmem:[%s4442_s0 + $0x3f0] sm:$0xff] }
  0x2e   :  { %v3002_v59 = vpack.c.bf16 %v281_v33, %v279_v28  ;;  %v285_v62 = vmax.f32 %v141_v41, 0.0  ;;  %v220_v11 = vmax.f32 %v76_v58, 0.0  ;;  %v284_v17 = vmax.f32 %v140_v4, 0.0  ;;  %v147_v28 = vld [vmem:[%s4442_s0 + $0x428] sm:$0xff]  ;;  %v149_v33 = vld [vmem:[%s4442_s0 + $0x438] sm:$0xff]  ;;  %v308_v58 = vld [vmem:[%s4443_s1 + $0x30] sm:$0xff] }
  0x2f   :  { %2226 = vmatpush1.bf16.msra.mxu1 %v2225_v9  ;;  %v210_v9 = vmax.f32 %v66_v46, 0.0  ;;  %v2992_v42 = vpack.c.bf16 %v276_v16, %v274_v13  ;;  %v214_v46 = vmax.f32 %v70_v23, 0.0  ;;  %v2243_v13 = vpack.c.bf16 %v221_v56, %v219_v55  ;;  %v302_v55 = vld [vmem:[%s4443_s1] sm:$0xff]  ;;  %v304_v56 = vld [vmem:[%s4443_s1 + $0x10] sm:$0xff] }
  0x30   :  { %2290 = vmatpush1.bf16.msra.mxu0 %v2906_v25  ;;  %2228 = vmatprep.subr.bf16.mxu1 %v2227_v26  ;;  %v134_v26 = vld [vmem:[%s4442_s0 + $0x3c0] sm:$0xff]  ;;  %v282_v16 = vmax.f32 %v138_v63, 0.0  ;;  %v3020_v18 = vpack.c.bf16 %v285_v62, %v283_v60  ;;  %v291_v41 = vmax.f32 %v147_v28, 0.0 }
  0x31   :  { %2292 = vmatprep.subr.bf16.mxu0 %v2915_v32  ;;  %v2237_v39 = vpack.c.bf16 %v212_v10, %v210_v9  ;;  %v218_v10 = vmax.f32 %v74_v57, 0.0  ;;  %v310_v63 = vld [vmem:[%s4443_s1 + $0x40] sm:$0xff] }
  0x32   :  { %v3035_v36 = vpack.c.bf16 %v284_v17, %v282_v16  ;;  %v309_v16 = vld [vmem:[%s4443_s1 + $0x38] sm:$0xff] }
  0x33   :  { %2230 = vmatpush1.bf16.msra.mxu1 %v2229_v48  ;;  %v216_v48 = vmax.f32 %v72_v24, 0.0  ;;  %v142_v24 = vld [vmem:[%s4442_s0 + $0x400] sm:$0xff]  ;;  %v2245_v35 = vpack.c.bf16 %v220_v11, %v218_v10  ;;  %v152_v10 = vld [vmem:[%s4442_s0 + $0x450] sm:$0xff]  ;;  %v157_v11 = vld [vmem:[%s4442_s0 + $0x478] sm:$0xff] }
  0x34   :  { %2294 = vmatpush1.bf16.msra.mxu0 %v2935_v49  ;;  %2232 = vmatprep.subr.bf16.mxu1 %v2231_v52  ;;  %v278_v52 = vmax.f32 %v134_v26, 0.0  ;;  %v144_v26 = vld [vmem:[%s4442_s0 + $0x410] sm:$0xff]  ;;  %v286_v38 = vmax.f32 %v142_v24, 0.0  ;;  %v313_v17 = vld [vmem:[%s4443_s1 + $0x58] sm:$0xff]  ;;  %v296_v24 = vmax.f32 %v152_v10, 0.0 }
  0x35   :  { %2296 = vmatprep.subr.bf16.mxu0 %v2954_v2  ;;  %v2241_v9 = vpack.c.bf16 %v216_v48, %v214_v46  ;;  %v146_v46 = vld [vmem:[%s4442_s0 + $0x420] sm:$0xff]  ;;  %v148_v48 = vld [vmem:[%s4442_s0 + $0x430] sm:$0xff] }
  0x36   :  { %v3017_v12 = vpack.c.bf16 %v280_v53, %v278_v52  ;;  %v151_v52 = vld [vmem:[%s4442_s0 + $0x448] sm:$0xff]  ;;  %v153_v53 = vld [vmem:[%s4442_s0 + $0x458] sm:$0xff]  ;;  %v290_v60 = vmax.f32 %v146_v46, 0.0  ;;  %v292_v62 = vmax.f32 %v148_v48, 0.0  ;;  %v344_v10 = vld [vmem:[%s4443_s1 + $0x150] sm:$0xff] }
  0x37   :  { %2234 = vmatpush1.bf16.msra.mxu1 %v2233_v8  ;;  %v145_v8 = vld [vmem:[%s4442_s0 + $0x418] sm:$0xff] }
  0x38   :  { %2298 = vmatpush1.bf16.msra.mxu0 %v2963_v19  ;;  %2236 = vmatprep.subr.bf16.mxu1 %v2235_v20  ;;  %v287_v20 = vmax.f32 %v143_v6, 0.0  ;;  %v289_v23 = vmax.f32 %v145_v8, 0.0  ;;  %v295_v6 = vmax.f32 %v151_v52, 0.0  ;;  %v297_v8 = vmax.f32 %v153_v53, 0.0  ;;  %v317_v53 = vld [vmem:[%s4443_s1 + $0x78] sm:$0xff] }
  0x39   :  { %2300 = vmatprep.subr.bf16.mxu0 %v2975_v27 }
  0x3a   :  { %v2311_v40 = vpack.c.bf16 %v289_v23, %v287_v20  ;;  %v2317_v20 = vpack.c.bf16 %v292_v62, %v290_v60  ;;  %v2319_v28 = vpack.c.bf16 %v297_v8, %v295_v6  ;;  %v328_v60 = vld [vmem:[%s4443_s1 + $0xd0] sm:$0xff]  ;;  %v329_v62 = vld [vmem:[%s4443_s1 + $0xd8] sm:$0xff]  ;;  %v338_v6 = vld [vmem:[%s4443_s1 + $0x120] sm:$0xff] }
  0x3b   :  { %2238 = vmatpush1.bf16.msra.mxu1 %v2237_v39  ;;  %v288_v39 = vmax.f32 %v144_v26, 0.0  ;;  %v315_v26 = vld [vmem:[%s4443_s1 + $0x68] sm:$0xff] }
  0x3c   :  { %2302 = vmatpush1.bf16.msra.mxu0 %v2992_v42  ;;  %2240 = vmatprep.subr.bf16.mxu1 %v2239_v44  ;;  %v293_v44 = vmax.f32 %v149_v33, 0.0  ;;  %v339_v8 = vld [vmem:[%s4443_s1 + $0x128] sm:$0xff] }
  0x3d   :  { %2304 = vmatprep.subr.bf16.mxu0 %v3002_v59  ;;  %v2313_v57 = vpack.c.bf16 %v288_v39, %v286_v38  ;;  %v154_v38 = vld [vmem:[%s4442_s0 + $0x460] sm:$0xff]  ;;  %v156_v39 = vld [vmem:[%s4442_s0 + $0x470] sm:$0xff] }
  0x3e   :  { %v2315_v4 = vpack.c.bf16 %v293_v44, %v291_v41  ;;  %v318_v41 = vld [vmem:[%s4443_s1 + $0x80] sm:$0xff]  ;;  %v298_v46 = vmax.f32 %v154_v38, 0.0  ;;  %v300_v48 = vmax.f32 %v156_v39, 0.0  ;;  %v331_v38 = vld [vmem:[%s4443_s1 + $0xe8] sm:$0xff]  ;;  %v393_v39 = vld [vmem:[%s4443_s1 + $0x2d8] sm:$0xff] }
  0x3f   :  { %2242 = vmatpush1.bf16.msra.mxu1 %v2241_v9  ;;  %v150_v9 = vld [vmem:[%s4442_s0 + $0x440] sm:$0xff] }
  0x40   :  { %2306 = vmatpush1.bf16.msra.mxu0 %v3017_v12  ;;  %2244 = vmatprep.subr.bf16.mxu1 %v2243_v13  ;;  %v307_v13 = vld [vmem:[%s4443_s1 + $0x28] sm:$0xff]  ;;  %v294_v23 = vmax.f32 %v150_v9, 0.0 }
  0x41   :  { %2308 = vmatprep.subr.bf16.mxu0 %v3020_v18  ;;  %v343_v9 = vld [vmem:[%s4443_s1 + $0x148] sm:$0xff] }
  0x42   :  { %v2321_v44 = vpack.c.bf16 %v296_v24, %v294_v23  ;;  %v363_v23 = vld [vmem:[%s4443_s1 + $0x1e8] sm:$0xff]  ;;  %v306_v24 = vld [vmem:[%s4443_s1 + $0x20] sm:$0xff] }
  0x43   :  { %2246 = vmatpush1.bf16.msra.mxu1 %v2245_v35  ;;  %v301_v35 = vmax.f32 %v157_v11, 0.0  ;;  %v349_v11 = vld [vmem:[%s4443_s1 + $0x178] sm:$0xff] }
  0x44   :  { %2310 = vmatpush1.bf16.msra.mxu0 %v3035_v36  ;;  %2327 = vmatprep.subr.bf16.mxu1 %v2571_v22  ;;  %v155_v22 = vld [vmem:[%s4442_s0 + $0x468] sm:$0xff] }
  0x45   :  { %2312 = vmatprep.subr.bf16.mxu0 %v2311_v40  ;;  %v299_v33 = vmax.f32 %v155_v22, 0.0  ;;  %v314_v40 = vld [vmem:[%s4443_s1 + $0x60] sm:$0xff]  ;;  %v348_v22 = vld [vmem:[%s4443_s1 + $0x170] sm:$0xff] }
  0x46   :  { %560 = vmatmul.mubr.f32.vlgmr.msra.gmra.mrb[0].mxu1 %v302_v55  ;;  %v319_v55 = vld [vmem:[%s4443_s1 + $0x88] sm:$0xff] }
  0x47   :  { %769 = vmatmul.mubr.f32.vlgmr.msra.gmra.mrb[0].mxu0 %v304_v56  ;;  %565 = vmatprep.mubr.f32.mxu1 %v308_v58  ;;  %v2323_v52 = vpack.c.bf16 %v301_v35, %v299_v33  ;;  %v2325_v56 = vpack.c.bf16 %v300_v48, %v298_v46  ;;  %v324_v58 = vld [vmem:[%s4443_s1 + $0xb0] sm:$0xff]  ;;  %v321_v33 = vld [vmem:[%s4443_s1 + $0x98] sm:$0xff]  ;;  %v326_v35 = vld [vmem:[%s4443_s1 + $0xc0] sm:$0xff] }
  0x48   :  { %2314 = vmatpush1.bf16.msra.mxu0 %v2313_v57  ;;  %774 = vmatprep.mubr.f32.mxu0 %v310_v63  ;;  %v322_v57 = vld [vmem:[%s4443_s1 + $0xa0] sm:$0xff]  ;;  %v333_v63 = vld [vmem:[%s4443_s1 + $0xf8] sm:$0xff]  ;;  %v403_v46 = vld [vmem:[%s4443_s1 + $0x328] sm:$0xff] }
  0x49   :  { %2343 = vmatpush1.bf16.msra.mxu1 %v2582_v29  ;;  %2316 = vmatprep.subr.bf16.mxu0 %v2315_v4  ;;  %v312_v29 = vld [vmem:[%s4443_s1 + $0x50] sm:$0xff]  ;;  %v334_v4 = vld [vmem:[%s4443_s1 + $0x100] sm:$0xff] }
  0x4a   :  { %566 = vmatmul.mubr.f32.gmra.mrb[2].mxu1 %v307_v13  ;;  %2328 = vmatprep.subr.bf16.mxu1 %v2604_v43  ;;  %v320_v43 = vld [vmem:[%s4443_s1 + $0x90] sm:$0xff]  ;;  %v353_v13 = vld [vmem:[%s4443_s1 + $0x198] sm:$0xff]  ;;  %v402_v48 = vld [vmem:[%s4443_s1 + $0x320] sm:$0xff] }
  0x4b   :  { %775 = vmatmul.mubr.f32.gmra.mrb[2].mxu0 %v309_v16  ;;  %571 = vmatprep.mubr.f32.mxu1 %v313_v17  ;;  %v354_v16 = vld [vmem:[%s4443_s1 + $0x1a0] sm:$0xff] }
  0x4c   :  { %780 = vmatprep.mubr.f32.mxu0 %v315_v26  ;;  %2318 = vmatpush1.bf16.msra.mxu0 %v2317_v20  ;;  %v358_v17 = vld [vmem:[%s4443_s1 + $0x1c0] sm:$0xff]  ;;  %v359_v20 = vld [vmem:[%s4443_s1 + $0x1c8] sm:$0xff] }
  0x4d   :  { %2344 = vmatpush1.bf16.msra.mxu1 %v2615_v50  ;;  %2320 = vmatprep.subr.bf16.mxu0 %v2319_v28  ;;  %v323_v50 = vld [vmem:[%s4443_s1 + $0xa8] sm:$0xff]  ;;  %v316_v28 = vld [vmem:[%s4443_s1 + $0x70] sm:$0xff] }
  0x4e   :  { %572 = vmatmul.mubr.f32.gmra.mrb[4].mxu1 %v312_v29  ;;  %2329 = vmatprep.subr.bf16.mxu1 %v2636_v0  ;;  %v325_v0 = vld [vmem:[%s4443_s1 + $0xb8] sm:$0xff]  ;;  %v311_v26 = vld [vmem:[%s4443_s1 + $0x48] sm:$0xff]  ;;  %v336_v29 = vld [vmem:[%s4443_s1 + $0x110] sm:$0xff] }
  0x4f   :  { %781 = vmatmul.mubr.f32.gmra.mrb[4].mxu0 %v314_v40  ;;  %577 = vmatprep.mubr.f32.mxu1 %v318_v41  ;;  %v398_v40 = vld [vmem:[%s4443_s1 + $0x300] sm:$0xff]  ;;  %v397_v41 = vld [vmem:[%s4443_s1 + $0x2f8] sm:$0xff] }
  0x50   :  { %786 = vmatprep.mubr.f32.mxu0 %v320_v43  ;;  %2322 = vmatpush1.bf16.msra.mxu0 %v2321_v44  ;;  %v341_v44 = vld [vmem:[%s4443_s1 + $0x138] sm:$0xff]  ;;  %v346_v43 = vld [vmem:[%s4443_s1 + $0x160] sm:$0xff] }
  0x51   :  { %2345 = vmatpush1.bf16.msra.mxu1 %v2648_v7  ;;  %2324 = vmatprep.subr.bf16.mxu0 %v2323_v52  ;;  %v330_v7 = vld [vmem:[%s4443_s1 + $0xe0] sm:$0xff]  ;;  %v408_v52 = vld [vmem:[%s4443_s1 + $0x350] sm:$0xff] }
  0x52   :  { %578 = vmatmul.mubr.f32.gmra.mrb[6].mxu1 %v317_v53  ;;  %2330 = vmatprep.subr.bf16.mxu1 %v2669_v21  ;;  %v327_v21 = vld [vmem:[%s4443_s1 + $0xc8] sm:$0xff] }
  0x53   :  { %787 = vmatmul.mubr.f32.gmra.mrb[6].mxu0 %v319_v55  ;;  %583 = vmatprep.mubr.f32.mxu1 %v323_v50  ;;  %v407_v53 = vld [vmem:[%s4443_s1 + $0x348] sm:$0xff]  ;;  %v413_v50 = vld [vmem:[%s4443_s1 + $0x378] sm:$0xff] }
  0x54   :  { %792 = vmatprep.mubr.f32.mxu0 %v325_v0  ;;  %2326 = vmatpush1.bf16.msra.mxu0 %v2325_v56  ;;  %v351_v55 = vld [vmem:[%s4443_s1 + $0x188] sm:$0xff]  ;;  %v412_v56 = vld [vmem:[%s4443_s1 + $0x370] sm:$0xff] }
  0x55   :  { %2346 = vmatpush1.bf16.msra.mxu1 %v2680_v30  ;;  %v335_v30 = vld [vmem:[%s4443_s1 + $0x108] sm:$0xff]  ;;  %v356_v0 = vld [vmem:[%s4443_s1 + $0x1b0] sm:$0xff] }
  0x56   :  { %584 = vmatmul.mubr.f32.gmra.mrb[8].mxu1 %v322_v57  ;;  %2331 = vmatprep.subr.bf16.mxu1 %v2702_v45  ;;  %v332_v45 = vld [vmem:[%s4443_s1 + $0xf0] sm:$0xff]  ;;  %v418_v57 = vld [vmem:[%s4443_s1 + $0x3a0] sm:$0xff] }
  0x57   :  { %793 = vmatmul.mubr.f32.gmra.mrb[8].mxu0 %v324_v58  ;;  %589 = vmatprep.mubr.f32.mxu1 %v328_v60  ;;  %v417_v58 = vld [vmem:[%s4443_s1 + $0x398] sm:$0xff] }
  0x58   :  { %798 = vmatprep.mubr.f32.mxu0 %v330_v7  ;;  %v361_v60 = vld [vmem:[%s4443_s1 + $0x1d8] sm:$0xff] }
  0x59   :  { %2347 = vmatpush1.bf16.msra.mxu1 %v2723_v61  ;;  %v340_v61 = vld [vmem:[%s4443_s1 + $0x130] sm:$0xff]  ;;  %v365_v7 = vld [vmem:[%s4443_s1 + $0x1f8] sm:$0xff] }
  0x5a   :  { %590 = vmatmul.mubr.f32.gmra.mrb[10].mxu1 %v327_v21  ;;  %2332 = vmatprep.subr.bf16.mxu1 %v2729_v3  ;;  %v337_v3 = vld [vmem:[%s4443_s1 + $0x118] sm:$0xff]  ;;  %v364_v21 = vld [vmem:[%s4443_s1 + $0x1f0] sm:$0xff] }
  0x5b   :  { %799 = vmatmul.mubr.f32.gmra.mrb[10].mxu0 %v329_v62  ;;  %595 = vmatprep.mubr.f32.mxu1 %v333_v63  ;;  %v366_v62 = vld [vmem:[%s4443_s1 + $0x200] sm:$0xff] }
  0x5c   :  { %804 = vmatprep.mubr.f32.mxu0 %v335_v30  ;;  %v370_v63 = vld [vmem:[%s4443_s1 + $0x220] sm:$0xff]  ;;  %v369_v30 = vld [vmem:[%s4443_s1 + $0x218] sm:$0xff] }
  0x5d   :  { %2348 = vmatpush1.bf16.msra.mxu1 %v2746_v15  ;;  %v345_v15 = vld [vmem:[%s4443_s1 + $0x158] sm:$0xff] }
  0x5e   :  { %596 = vmatmul.mubr.f32.gmra.mrb[12].mxu1 %v332_v45  ;;  %2333 = vmatprep.subr.bf16.mxu1 %v2768_v31  ;;  %v342_v31 = vld [vmem:[%s4443_s1 + $0x140] sm:$0xff]  ;;  %v371_v45 = vld [vmem:[%s4443_s1 + $0x228] sm:$0xff] }
  0x5f   :  { %805 = vmatmul.mubr.f32.gmra.mrb[12].mxu0 %v334_v4  ;;  %601 = vmatprep.mubr.f32.mxu1 %v338_v6  ;;  %v375_v4 = vld [vmem:[%s4443_s1 + $0x248] sm:$0xff]  ;;  %v374_v6 = vld [vmem:[%s4443_s1 + $0x240] sm:$0xff] }
  0x60   :  { %810 = vmatprep.mubr.f32.mxu0 %v340_v61  ;;  %v376_v61 = vld [vmem:[%s4443_s1 + $0x250] sm:$0xff] }
  0x61   :  { %2349 = vmatpush1.bf16.msra.mxu1 %v2783_v47  ;;  %v350_v47 = vld [vmem:[%s4443_s1 + $0x180] sm:$0xff] }
  0x62   :  { %602 = vmatmul.mubr.f32.gmra.mrb[14].mxu1 %v337_v3  ;;  %2334 = vmatprep.subr.bf16.mxu1 %v2789_v51  ;;  %v347_v51 = vld [vmem:[%s4443_s1 + $0x168] sm:$0xff]  ;;  %v380_v3 = vld [vmem:[%s4443_s1 + $0x270] sm:$0xff] }
  0x63   :  { %811 = vmatmul.mubr.f32.gmra.mrb[14].mxu0 %v339_v8  ;;  %607 = vmatprep.mubr.f32.mxu1 %v343_v9  ;;  %v379_v8 = vld [vmem:[%s4443_s1 + $0x268] sm:$0xff]  ;;  %v381_v9 = vld [vmem:[%s4443_s1 + $0x278] sm:$0xff] }
  0x64   :  { %816 = vmatprep.mubr.f32.mxu0 %v345_v15  ;;  %v385_v15 = vld [vmem:[%s4443_s1 + $0x298] sm:$0xff] }
  0x65   :  { %2350 = vmatpush1.bf16.msra.mxu1 %v2809_v1  ;;  %v355_v1 = vld [vmem:[%s4443_s1 + $0x1a8] sm:$0xff] }
  0x66   :  { %608 = vmatmul.mubr.f32.gmra.mrb[16].mxu1 %v342_v31  ;;  %2335 = vmatprep.subr.bf16.mxu1 %v2828_v14  ;;  %v352_v14 = vld [vmem:[%s4443_s1 + $0x190] sm:$0xff] }
  0x67   :  { %817 = vmatmul.mubr.f32.gmra.mrb[16].mxu0 %v344_v10  ;;  %613 = vmatprep.mubr.f32.mxu1 %v348_v22  ;;  %v384_v31 = vld [vmem:[%s4443_s1 + $0x290] sm:$0xff]  ;;  %v386_v10 = vld [vmem:[%s4443_s1 + $0x2a0] sm:$0xff] }
  0x68   :  { %822 = vmatprep.mubr.f32.mxu0 %v350_v47  ;;  %v390_v22 = vld [vmem:[%s4443_s1 + $0x2c0] sm:$0xff]  ;;  %v389_v47 = vld [vmem:[%s4443_s1 + $0x2b8] sm:$0xff] }
  0x69   :  { %2351 = vmatpush1.bf16.msra.mxu1 %v2843_v34  ;;  %v360_v34 = vld [vmem:[%s4443_s1 + $0x1d0] sm:$0xff] }
  0x6a   :  { %614 = vmatmul.mubr.f32.gmra.mrb[18].mxu1 %v347_v51  ;;  %2336 = vmatprep.subr.bf16.mxu1 %v2849_v37  ;;  %v357_v37 = vld [vmem:[%s4443_s1 + $0x1b8] sm:$0xff]  ;;  %v391_v51 = vld [vmem:[%s4443_s1 + $0x2c8] sm:$0xff] }
  0x6b   :  { %823 = vmatmul.mubr.f32.gmra.mrb[18].mxu0 %v349_v11  ;;  %619 = vmatprep.mubr.f32.mxu1 %v353_v13  ;;  %v395_v11 = vld [vmem:[%s4443_s1 + $0x2e8] sm:$0xff]  ;;  %v394_v13 = vld [vmem:[%s4443_s1 + $0x2e0] sm:$0xff] }
  0x6c   :  { %828 = vmatprep.mubr.f32.mxu0 %v355_v1  ;;  %v396_v1 = vld [vmem:[%s4443_s1 + $0x2f0] sm:$0xff] }
  0x6d   :  { %2352 = vmatpush1.bf16.msra.mxu1 %v2869_v54  ;;  %v362_v54 = vld [vmem:[%s4443_s1 + $0x1e0] sm:$0xff] }
  0x6e   :  { %620 = vmatmul.mubr.f32.gmra.mrb[20].mxu1 %v352_v14  ;;  %2337 = vmatprep.subr.bf16.mxu1 %v2888_v5  ;;  %v2511_v5 = vmov 0.0   ;;  %v400_v14 = vld [vmem:[%s4443_s1 + $0x310] sm:$0xff] }
  0x6f   :  { %829 = vmatmul.mubr.f32.gmra.mrb[20].mxu0 %v354_v16  ;;  %625 = vmatprep.mubr.f32.mxu1 %v358_v17  ;;  %v399_v16 = vld [vmem:[%s4443_s1 + $0x308] sm:$0xff]  ;;  %v401_v17 = vld [vmem:[%s4443_s1 + $0x318] sm:$0xff] }
  0x70   :  { %834 = vmatprep.mubr.f32.mxu0 %v360_v34  ;;  %v405_v34 = vld [vmem:[%s4443_s1 + $0x338] sm:$0xff] }
  0x71   :  { %2353 = vmatpush1.bf16.msra.mxu1 %v2906_v25  ;;  %v368_v25 = vld [vmem:[%s4443_s1 + $0x210] sm:$0xff] }
  0x72   :  { %626 = vmatmul.mubr.f32.gmra.mrb[22].mxu1 %v357_v37  ;;  %2338 = vmatprep.subr.bf16.mxu1 %v2915_v32  ;;  %v367_v32 = vld [vmem:[%s4443_s1 + $0x208] sm:$0xff]  ;;  %v404_v37 = vld [vmem:[%s4443_s1 + $0x330] sm:$0xff] }
  0x73   :  { %835 = vmatmul.mubr.f32.gmra.mrb[22].mxu0 %v359_v20  ;;  %631 = vmatprep.mubr.f32.mxu1 %v363_v23  ;;  %v406_v20 = vld [vmem:[%s4443_s1 + $0x340] sm:$0xff] }
  0x74   :  { %977 = vmatprep.mubr.f32.mxu0 %v2511_v5  ;;  %v410_v23 = vld [vmem:[%s4443_s1 + $0x360] sm:$0xff] }
  0x75   :  { %2354 = vmatpush1.bf16.msra.mxu1 %v2935_v49  ;;  %v373_v49 = vld [vmem:[%s4443_s1 + $0x238] sm:$0xff] }
  0x76   :  { %632 = vmatmul.mubr.f32.gmra.mrb[24].mxu1 %v362_v54  ;;  %2339 = vmatprep.subr.bf16.mxu1 %v2954_v2  ;;  %v372_v2 = vld [vmem:[%s4443_s1 + $0x230] sm:$0xff]  ;;  %v409_v54 = vld [vmem:[%s4443_s1 + $0x358] sm:$0xff] }
  0x77   :  { %2159 = vmatmul.mubr.msk.f32.vlgmr.msra.gmra.mrb[0].mxu0 %vm422_vm0, %v306_v24  ;;  %637 = vmatprep.mubr.f32.mxu1 %v368_v25  ;;  %v411_v24 = vld [vmem:[%s4443_s1 + $0x368] sm:$0xff] }
  0x78   :  { %983 = vmatprep.mubr.f32.mxu0 %v2511_v5  ;;  %v415_v25 = vld [vmem:[%s4443_s1 + $0x388] sm:$0xff] }
  0x79   :  { %2355 = vmatpush1.bf16.msra.mxu1 %v2963_v19  ;;  %v378_v19 = vld [vmem:[%s4443_s1 + $0x260] sm:$0xff] }
  0x7a   :  { %638 = vmatmul.mubr.f32.gmra.mrb[26].mxu1 %v367_v32  ;;  %2340 = vmatprep.subr.bf16.mxu1 %v2975_v27  ;;  %v377_v27 = vld [vmem:[%s4443_s1 + $0x258] sm:$0xff]  ;;  %v414_v32 = vld [vmem:[%s4443_s1 + $0x380] sm:$0xff] }
  0x7b   :  { %2160 = vmatmul.mubr.msk.f32.gmra.mrb[2].mxu0 %vm422_vm0, %v311_v26  ;;  %643 = vmatprep.mubr.f32.mxu1 %v373_v49  ;;  %v416_v26 = vld [vmem:[%s4443_s1 + $0x390] sm:$0xff] }
  0x7c   :  { %989 = vmatprep.mubr.f32.mxu0 %v2511_v5  ;;  %v420_v49 = vld [vmem:[%s4443_s1 + $0x3b0] sm:$0xff] }
  0x7d   :  { %2356 = vmatpush1.bf16.msra.mxu1 %v2992_v42  ;;  %v383_v42 = vld [vmem:[%s4443_s1 + $0x288] sm:$0xff] }
  0x7e   :  { %644 = vmatmul.mubr.f32.gmra.mrb[28].mxu1 %v372_v2  ;;  %2341 = vmatprep.subr.bf16.mxu1 %v3002_v59  ;;  %v382_v59 = vld [vmem:[%s4443_s1 + $0x280] sm:$0xff]  ;;  %v419_v2 = vld [vmem:[%s4443_s1 + $0x3a8] sm:$0xff] }
  0x7f   :  { %2161 = vmatmul.mubr.msk.f32.gmra.mrb[4].mxu0 %vm422_vm0, %v316_v28  ;;  %649 = vmatprep.mubr.f32.mxu1 %v378_v19  ;;  %v421_v28 = vld [vmem:[%s4443_s1 + $0x3b8] sm:$0xff] }
  0x80   :  { %995 = vmatprep.mubr.f32.mxu0 %v2511_v5 }
  0x81   :  { %2357 = vmatpush1.bf16.msra.mxu1 %v3017_v12  ;;  %v388_v12 = vld [vmem:[%s4443_s1 + $0x2b0] sm:$0xff] }
  0x82   :  { %650 = vmatmul.mubr.f32.gmra.mrb[30].mxu1 %v377_v27  ;;  %2342 = vmatprep.subr.bf16.mxu1 %v3020_v18  ;;  %v387_v18 = vld [vmem:[%s4443_s1 + $0x2a8] sm:$0xff] }
  0x83   :  { %2162 = vmatmul.mubr.msk.f32.gmra.mrb[6].mxu0 %vm422_vm0, %v321_v33  ;;  %655 = vmatprep.mubr.f32.mxu1 %v383_v42 }
  0x84   :  { %1001 = vmatprep.mubr.f32.mxu0 %v2511_v5 }
  0x85   :  { %2358 = vmatpush1.bf16.msra.mxu1 %v3035_v36  ;;  %v392_v36 = vld [vmem:[%s4443_s1 + $0x2d0] sm:$0xff] }
  0x86   :  { %656 = vmatmul.mubr.f32.gmra.mrb[32].mxu1 %v382_v59 }
  0x87   :  { %2163 = vmatmul.mubr.msk.f32.gmra.mrb[8].mxu0 %vm422_vm0, %v326_v35  ;;  %661 = vmatprep.mubr.f32.mxu1 %v388_v12 }
  0x88   :  { %1007 = vmatprep.mubr.f32.mxu0 %v2511_v5 }
  0x8a   :  { %662 = vmatmul.mubr.f32.gmra.mrb[34].mxu1 %v387_v18 }
  0x8b   :  { %2164 = vmatmul.mubr.msk.f32.gmra.mrb[10].mxu0 %vm422_vm0, %v331_v38  ;;  %667 = vmatprep.mubr.f32.mxu1 %v393_v39 }
  0x8c   :  { %1013 = vmatprep.mubr.f32.mxu0 %v2511_v5 }
  0x8e   :  { %668 = vmatmul.mubr.f32.gmra.mrb[36].mxu1 %v392_v36 }
  0x8f   :  { %2165 = vmatmul.mubr.msk.f32.gmra.mrb[12].mxu0 %vm422_vm0, %v336_v29  ;;  %673 = vmatprep.mubr.f32.mxu1 %v398_v40 }
  0x90   :  { %1019 = vmatprep.mubr.f32.mxu0 %v2511_v5 }
  0x92   :  { %674 = vmatmul.mubr.f32.gmra.mrb[38].mxu1 %v397_v41 }
  0x93   :  { %2166 = vmatmul.mubr.msk.f32.gmra.mrb[14].mxu0 %vm422_vm0, %v341_v44  ;;  %679 = vmatprep.mubr.f32.mxu1 %v403_v46 }
  0x94   :  { %1025 = vmatprep.mubr.f32.mxu0 %v2511_v5 }
  0x96   :  { %680 = vmatmul.mubr.f32.gmra.mrb[40].mxu1 %v402_v48 }
  0x97   :  { %2167 = vmatmul.mubr.msk.f32.gmra.mrb[16].mxu0 %vm422_vm0, %v346_v43  ;;  %685 = vmatprep.mubr.f32.mxu1 %v408_v52 }
  0x98   :  { %1031 = vmatprep.mubr.f32.mxu0 %v2511_v5 }
  0x9a   :  { %686 = vmatmul.mubr.f32.gmra.mrb[42].mxu1 %v407_v53 }
  0x9b   :  { %2168 = vmatmul.mubr.msk.f32.gmra.mrb[18].mxu0 %vm422_vm0, %v351_v55  ;;  %691 = vmatprep.mubr.f32.mxu1 %v413_v50 }
  0x9c   :  { %1037 = vmatprep.mubr.f32.mxu0 %v2511_v5 }
  0x9e   :  { %692 = vmatmul.mubr.f32.gmra.mrb[44].mxu1 %v412_v56 }
  0x9f   :  { %2169 = vmatmul.mubr.msk.f32.gmra.mrb[20].mxu0 %vm422_vm0, %v356_v0  ;;  %697 = vmatprep.mubr.f32.mxu1 %v418_v57 }
  0xa0   :  { %1043 = vmatprep.mubr.f32.mxu0 %v2511_v5 }
  0xa2   :  { %698 = vmatmul.mubr.f32.gmra.mrb[46].mxu1 %v417_v58 }
  0xa3   :  { %2170 = vmatmul.mubr.msk.f32.gmra.mrb[22].mxu0 %vm422_vm0, %v361_v60  ;;  %840 = vmatprep.mubr.f32.mxu1 %v365_v7 }
  0xa4   :  { %1049 = vmatprep.mubr.f32.mxu0 %v2511_v5 }
  0xa6   :  { %841 = vmatmul.mubr.f32.vlgmr.msra.gmra.mrb[24].mxu1 %v364_v21 }
  0xa7   :  { %2171 = vmatmul.mubr.msk.f32.gmra.mrb[24].mxu0 %vm422_vm0, %v366_v62  ;;  %846 = vmatprep.mubr.f32.mxu1 %v370_v63 }
  0xa8   :  { %1055 = vmatprep.mubr.f32.mxu0 %v2511_v5 }
  0xaa   :  { %847 = vmatmul.mubr.f32.gmra.mrb[26].mxu1 %v369_v30 }
  0xab   :  { %2172 = vmatmul.mubr.msk.f32.gmra.mrb[26].mxu0 %vm422_vm0, %v371_v45  ;;  %852 = vmatprep.mubr.f32.mxu1 %v375_v4 }
  0xac   :  { %1061 = vmatprep.mubr.f32.mxu0 %v2511_v5 }
  0xae   :  { %853 = vmatmul.mubr.f32.gmra.mrb[28].mxu1 %v374_v6 }
  0xaf   :  { %2173 = vmatmul.mubr.msk.f32.gmra.mrb[28].mxu0 %vm422_vm0, %v376_v61  ;;  %858 = vmatprep.mubr.f32.mxu1 %v380_v3 }
  0xb0   :  { %1067 = vmatprep.mubr.f32.mxu0 %v2511_v5 }
  0xb2   :  { %859 = vmatmul.mubr.f32.gmra.mrb[30].mxu1 %v379_v8 }
  0xb3   :  { %2174 = vmatmul.mubr.msk.f32.gmra.mrb[30].mxu0 %vm422_vm0, %v381_v9  ;;  %864 = vmatprep.mubr.f32.mxu1 %v385_v15 }
  0xb4   :  { %1073 = vmatprep.mubr.f32.mxu0 %v2511_v5 }
  0xb6   :  { %865 = vmatmul.mubr.f32.gmra.mrb[32].mxu1 %v384_v31 }
  0xb7   :  { %2175 = vmatmul.mubr.msk.f32.gmra.mrb[32].mxu0 %vm422_vm0, %v386_v10  ;;  %870 = vmatprep.mubr.f32.mxu1 %v390_v22 }
  0xb8   :  { %1079 = vmatprep.mubr.f32.mxu0 %v2511_v5 }
  0xba   :  { %871 = vmatmul.mubr.f32.gmra.mrb[34].mxu1 %v389_v47 }
  0xbb   :  { %2176 = vmatmul.mubr.msk.f32.gmra.mrb[34].mxu0 %vm422_vm0, %v391_v51  ;;  %876 = vmatprep.mubr.f32.mxu1 %v395_v11 }
  0xbc   :  { %1085 = vmatprep.mubr.f32.mxu0 %v2511_v5 }
  0xbe   :  { %877 = vmatmul.mubr.f32.gmra.mrb[36].mxu1 %v394_v13 }
  0xbf   :  { %2177 = vmatmul.mubr.msk.f32.gmra.mrb[36].mxu0 %vm422_vm0, %v396_v1  ;;  %882 = vmatprep.mubr.f32.mxu1 %v400_v14 }
  0xc0   :  { %1091 = vmatprep.mubr.f32.mxu0 %v2511_v5 }
  0xc2   :  { %883 = vmatmul.mubr.f32.gmra.mrb[38].mxu1 %v399_v16 }
  0xc3   :  { %2178 = vmatmul.mubr.msk.f32.gmra.mrb[38].mxu0 %vm422_vm0, %v401_v17  ;;  %888 = vmatprep.mubr.f32.mxu1 %v405_v34 }
  0xc4   :  { %1097 = vmatprep.mubr.f32.mxu0 %v2511_v5 }
  0xc6   :  { %889 = vmatmul.mubr.f32.gmra.mrb[40].mxu1 %v404_v37 }
  0xc7   :  { %2179 = vmatmul.mubr.msk.f32.gmra.mrb[40].mxu0 %vm422_vm0, %v406_v20  ;;  %894 = vmatprep.mubr.f32.mxu1 %v410_v23 }
  0xc8   :  { %1103 = vmatprep.mubr.f32.mxu0 %v2511_v5 }
  0xca   :  { %895 = vmatmul.mubr.f32.gmra.mrb[42].mxu1 %v409_v54 }
  0xcb   :  { %2180 = vmatmul.mubr.msk.f32.gmra.mrb[42].mxu0 %vm422_vm0, %v411_v24  ;;  %900 = vmatprep.mubr.f32.mxu1 %v415_v25 }
  0xcc   :  { %1109 = vmatprep.mubr.f32.mxu0 %v2511_v5 }
  0xce   :  { %901 = vmatmul.mubr.f32.gmra.mrb[44].mxu1 %v414_v32 }
  0xcf   :  { %2181 = vmatmul.mubr.msk.f32.gmra.mrb[44].mxu0 %vm422_vm0, %v416_v26  ;;  %906 = vmatprep.mubr.f32.mxu1 %v420_v49 }
  0xd0   :  { %1115 = vmatprep.mubr.f32.mxu0 %v2511_v5 }
  0xd2   :  { %907 = vmatmul.mubr.f32.gmra.mrb[46].mxu1 %v419_v2 }
  0xd3   :  { %2182 = vmatmul.mubr.msk.f32.gmra.mrb[46].mxu0 %vm422_vm0, %v421_v28 }
 0x119   :  { %v561_v19 = vpop.f32.mrb[0].mxu1 }
 0x11a   :  { %v563_v27 = vpop.f32.mrb[1].mxu1 }
 0x11d   :  { %v567_v33 = vpop.f32.mrb[2].mxu1 }
 0x11e   :  { %v569_v42 = vpop.f32.mrb[3].mxu1 }
 0x121   :  { %v573_v59 = vpop.f32.mrb[4].mxu1 }
 0x122   :  { %v575_v35 = vpop.f32.mrb[5].mxu1 }
 0x125   :  { %v579_v12 = vpop.f32.mrb[6].mxu1 }
 0x126   :  { %v581_v18 = vpop.f32.mrb[7].mxu1 }
 0x129   :  { %v585_v38 = vpop.f32.mrb[8].mxu1 }
 0x12a   :  { %v587_v39 = vpop.f32.mrb[9].mxu1 }
 0x12d   :  { %v3503_v36 = vpop.f32.mrb[10].mxu1 }
 0x12e   :  { %v3505_v5 = vpop.f32.mrb[11].mxu1 }
 0x131   :  { %v3507_v29 = vpop.f32.mrb[12].mxu1 }
 0x132   :  { %v3509_v40 = vpop.f32.mrb[13].mxu1 }
 0x135   :  { %v3511_v41 = vpop.f32.mrb[14].mxu1 }
 0x136   :  { %v3513_v44 = vpop.f32.mrb[15].mxu1 }
 0x139   :  { %v3515_v46 = vpop.f32.mrb[16].mxu1 }
 0x13a   :  { %v3517_v48 = vpop.f32.mrb[17].mxu1 }
 0x13d   :  { %v3519_v43 = vpop.f32.mrb[18].mxu1 }
 0x13e   :  { %v3521_v52 = vpop.f32.mrb[19].mxu1 }
 0x141   :  { %v3523_v53 = vpop.f32.mrb[20].mxu1 }
 0x142   :  { %v3525_v55 = vpop.f32.mrb[21].mxu1 }
 0x145   :  { %v3527_v50 = vpop.f32.mrb[22].mxu1 }
 0x146   :  { %v3529_v56 = vpop.f32.mrb[23].mxu1 }
 0x14a   :  { %v979_v0 = vpop.f32.mrb[0].mxu0 }
 0x14b   :  { %v3531_v57 = vadd.f32 %v979_v0, %v561_v19  ;;  %v981_v58 = vpop.f32.mrb[1].mxu0 }
 0x14c   :  { %v3533_v60 = vadd.f32 %v981_v58, %v563_v27 }
 0x14d   :  { %v1219_v61 = vmul.f32 %v3531_v57, %v3531_v57 }
 0x14e   :  { %v985_v7 = vpop.f32.mrb[2].mxu0  ;;  %v1123_v21 = vsel %vm1122_vm1, %v3533_v60, 0.0  ;;  %v1220_v62 = vmul.f32 %v3533_v60, %v3533_v60 }
 0x14f   :  { %v3539_v63 = vadd.f32 %v985_v7, %v567_v33  ;;  %v987_v30 = vpop.f32.mrb[3].mxu0  ;;  %v1124_v45 = vadd.f32 %v3531_v57, %v1123_v21 }
 0x150   :  { %v3542_v4 = vadd.f32 %v987_v30, %v569_v42  ;;  %v1267_v6 = vsel %vm1122_vm1, %v1220_v62, 0.0 }
 0x151   :  { %1125 = vadd.xlane.f32.xlu0 %v1124_v45  ;;  %v1268_v31 = vadd.f32 %v1267_v6, %v1219_v61  ;;  %v1221_v10 = vmul.f32 %v3539_v63, %v3539_v63 }
 0x152   :  { %v991_v3 = vpop.f32.mrb[4].mxu0  ;;  %v1222_v8 = vmul.f32 %v3542_v4, %v3542_v4  ;;  %v1127_v51 = vsel %vm1122_vm1, %v3542_v4, 0.0 }
 0x153   :  { %v3549_v9 = vadd.f32 %v991_v3, %v573_v59  ;;  %v993_v15 = vpop.f32.mrb[5].mxu0  ;;  %v1128_v34 = vadd.f32 %v3539_v63, %v1127_v51 }
 0x154   :  { %v3553_v22 = vadd.f32 %v993_v15, %v575_v35  ;;  %v1271_v47 = vsel %vm1122_vm1, %v1222_v8, 0.0 }
 0x155   :  { %1269 = vadd.xlane.f32.xlu0 %v1268_v31  ;;  %v1272_v11 = vadd.f32 %v1271_v47, %v1221_v10  ;;  %v1223_v54 = vmul.f32 %v3549_v9, %v3549_v9 }
 0x156   :  { %v997_v13 = vpop.f32.mrb[6].mxu0  ;;  %v1131_v1 = vsel %vm1122_vm1, %v3553_v22, 0.0  ;;  %v1224_v14 = vmul.f32 %v3553_v22, %v3553_v22 }
 0x157   :  { %v3562_v16 = vadd.f32 %v997_v13, %v579_v12  ;;  %v999_v17 = vpop.f32.mrb[7].mxu0  ;;  %1273 = vadd.xlane.f32.xlu1 %v1272_v11  ;;  %v1132_v23 = vadd.f32 %v3549_v9, %v1131_v1 }
 0x158   :  { %v3565_v37 = vadd.f32 %v999_v17, %v581_v18  ;;  %v1275_v20 = vsel %vm1122_vm1, %v1224_v14, 0.0 }
 0x159   :  { %1129 = vadd.xlane.f32.xlu0 %v1128_v34  ;;  %v1276_v2 = vadd.f32 %v1275_v20, %v1223_v54 }
 0x15a   :  { %v1003_v24 = vpop.f32.mrb[8].mxu0  ;;  %v1135_v25 = vsel %vm1122_vm1, %v3565_v37, 0.0  ;;  %v1226_v32 = vmul.f32 %v3565_v37, %v3565_v37 }
 0x15b   :  { %v3575_v26 = vadd.f32 %v1003_v24, %v585_v38  ;;  %v1005_v49 = vpop.f32.mrb[9].mxu0  ;;  %1133 = vadd.xlane.f32.xlu1 %v1132_v23  ;;  %v1136_v19 = vadd.f32 %v3562_v16, %v1135_v25  ;;  %v1225_v38 = vmul.f32 %v3562_v16, %v3562_v16 }
 0x15c   :  { %v3577_v28 = vadd.f32 %v1005_v49, %v587_v39  ;;  %v1279_v42 = vsel %vm1122_vm1, %v1226_v32, 0.0 }
 0x15d   :  { %1277 = vadd.xlane.f32.xlu0 %v1276_v2  ;;  %v1280_v58 = vadd.f32 %v1279_v42, %v1225_v38  ;;  %v1227_v7 = vmul.f32 %v3575_v26, %v3575_v26 }
 0x15e   :  { %v1009_v27 = vpop.f32.mrb[10].mxu0  ;;  %v1139_v33 = vsel %vm1122_vm1, %v3577_v28, 0.0  ;;  %v1228_v59 = vmul.f32 %v3577_v28, %v3577_v28 }
 0x15f   :  { %v3586_v35 = vadd.f32 %v1009_v27, %v3503_v36  ;;  %v1011_v12 = vpop.f32.mrb[11].mxu0  ;;  %1137 = vadd.xlane.f32.xlu1 %v1136_v19  ;;  %v1140_v18 = vadd.f32 %v3575_v26, %v1139_v33 }
 0x160   :  { %v3592_v39 = vadd.f32 %v1011_v12, %v3505_v5  ;;  %v1283_v0 = vsel %vm1122_vm1, %v1228_v59, 0.0 }
 0x161   :  { %1141 = vadd.xlane.f32.xlu0 %v1140_v18  ;;  %v1284_v5 = vadd.f32 %v1283_v0, %v1227_v7  ;;  %v1229_v47 = vmul.f32 %v3586_v35, %v3586_v35 }
 0x162   :  { %v1015_v21 = vpop.f32.mrb[12].mxu0  ;;  %v1143_v36 = vsel %vm1122_vm1, %v3592_v39, 0.0  ;;  %v1230_v62 = vmul.f32 %v3592_v39, %v3592_v39 }
 0x163   :  { %v3602_v30 = vadd.f32 %v1015_v21, %v3507_v29  ;;  %v1017_v45 = vpop.f32.mrb[13].mxu0  ;;  %1281 = vadd.xlane.f32.xlu1 %v1280_v58  ;;  %v1144_v61 = vadd.f32 %v3586_v35, %v1143_v36 }
 0x164   :  { %v3605_v6 = vadd.f32 %v1017_v45, %v3509_v40  ;;  %v1287_v15 = vsel %vm1122_vm1, %v1230_v62, 0.0 }
 0x165   :  { %1285 = vadd.xlane.f32.xlu0 %v1284_v5  ;;  %v1288_v13 = vadd.f32 %v1287_v15, %v1229_v47  ;;  %v1231_v1 = vmul.f32 %v3602_v30, %v3602_v30 }
 0x166   :  { %v1021_v3 = vpop.f32.mrb[14].mxu0  ;;  %v1147_v8 = vsel %vm1122_vm1, %v3605_v6, 0.0  ;;  %v1232_v31 = vmul.f32 %v3605_v6, %v3605_v6 }
 0x167   :  { %v3614_v29 = vadd.f32 %v1021_v3, %v3511_v41  ;;  %v1023_v10 = vpop.f32.mrb[15].mxu0  ;;  %1145 = vadd.xlane.f32.xlu1 %v1144_v61  ;;  %v1148_v40 = vadd.f32 %v3602_v30, %v1147_v8  ;;  %v2512_v3 = vmov 0  }
 0x168   :  { %v3620_v51 = vadd.f32 %v1023_v10, %v3513_v44  ;;  %v1291_v11 = vsel %vm1122_vm1, %v1232_v31, 0.0  ;;  %2459 = vset.pattern.permute.xlu0 %v2512_v3  ;;  %2460 = vset.pattern.permute.xlu1 %v2512_v3 }
 0x169   :  { %1149 = vadd.xlane.f32.xlu0 %v1148_v40  ;;  %v1292_v44 = vadd.f32 %v1291_v11, %v1231_v1  ;;  %v1233_v19 = vmul.f32 %v3614_v29, %v3614_v29 }
 0x16a   :  { %v1027_v14 = vpop.f32.mrb[16].mxu0  ;;  %v1151_v41 = vsel %vm1122_vm1, %v3620_v51, 0.0  ;;  %v1234_v17 = vmul.f32 %v3620_v51, %v3620_v51 }
 0x16b   :  { %v3630_v34 = vadd.f32 %v1027_v14, %v3515_v46  ;;  %v1029_v20 = vpop.f32.mrb[17].mxu0  ;;  %1289 = vadd.xlane.f32.xlu1 %v1288_v13  ;;  %v1152_v54 = vadd.f32 %v3614_v29, %v1151_v41 }
 0x16c   :  { %v3633_v23 = vadd.f32 %v1029_v20, %v3517_v48  ;;  %v1295_v32 = vsel %vm1122_vm1, %v1234_v17, 0.0 }
 0x16d   :  { %1293 = vadd.xlane.f32.xlu0 %v1292_v44  ;;  %v1296_v42 = vadd.f32 %v1295_v32, %v1233_v19  ;;  %v1235_v59 = vmul.f32 %v3630_v34, %v3630_v34 }
 0x16e   :  { %v1033_v24 = vpop.f32.mrb[18].mxu0  ;;  %v1155_v25 = vsel %vm1122_vm1, %v3633_v23, 0.0  ;;  %v1236_v49 = vmul.f32 %v3633_v23, %v3633_v23 }
 0x16f   :  { %v3642_v46 = vadd.f32 %v1033_v24, %v3519_v43  ;;  %v1035_v2 = vpop.f32.mrb[19].mxu0  ;;  %1153 = vadd.xlane.f32.xlu1 %v1152_v54  ;;  %v1156_v48 = vadd.f32 %v3630_v34, %v1155_v25 }
 0x170   :  { %v3648_v27 = vadd.f32 %v1035_v2, %v3521_v52  ;;  %v1299_v33 = vsel %vm1122_vm1, %v1236_v49, 0.0 }
 0x171   :  { %4476 = vst [vmem:[#allocation2_spill] sm:$0xff] %v3642_v46  ;;  %1157 = vadd.xlane.f32.xlu0 %v1156_v48  ;;  %v1300_v52 = vadd.f32 %v1299_v33, %v1235_v59  ;;  %v1237_v61 = vmul.f32 %v3642_v46, %v3642_v46 }
 0x172   :  { %4477 = vst [vmem:[#allocation3_spill] sm:$0xff] %v3648_v27  ;;  %v1039_v12 = vpop.f32.mrb[20].mxu0  ;;  %v1159_v43 = vsel %vm1122_vm1, %v3648_v27, 0.0  ;;  %v1238_v18 = vmul.f32 %v3648_v27, %v3648_v27 }
 0x173   :  { %v3658_v38 = vadd.f32 %v1039_v12, %v3523_v53  ;;  %v1041_v0 = vpop.f32.mrb[21].mxu0  ;;  %1297 = vadd.xlane.f32.xlu1 %v1296_v42  ;;  %v1160_v7 = vadd.f32 %v3642_v46, %v1159_v43 }
 0x174   :  { %v3661_v58 = vadd.f32 %v1041_v0, %v3525_v55  ;;  %v1303_v62 = vsel %vm1122_vm1, %v1238_v18, 0.0 }
 0x175   :  { %4478 = vst [vmem:[#allocation4_spill] sm:$0xff] %v3658_v38  ;;  %1301 = vadd.xlane.f32.xlu0 %v1300_v52  ;;  %v1304_v10 = vadd.f32 %v1303_v62, %v1237_v61 }
 0x176   :  { %4479 = vst [vmem:[#allocation5_spill] sm:$0xff] %v3661_v58  ;;  %v1045_v21 = vpop.f32.mrb[22].mxu0  ;;  %v1163_v36 = vsel %vm1122_vm1, %v3661_v58, 0.0  ;;  %v1240_v45 = vmul.f32 %v3661_v58, %v3661_v58 }
 0x177   :  { %v3670_v53 = vadd.f32 %v1045_v21, %v3527_v50  ;;  %v1047_v5 = vpop.f32.mrb[23].mxu0  ;;  %1161 = vadd.xlane.f32.xlu1 %v1160_v7  ;;  %v1164_v55 = vadd.f32 %v3658_v38, %v1163_v36  ;;  %v1239_v50 = vmul.f32 %v3658_v38, %v3658_v38 }
 0x178   :  { %v3676_v8 = vadd.f32 %v1047_v5, %v3529_v56  ;;  %v1307_v15 = vsel %vm1122_vm1, %v1240_v45, 0.0 }
 0x179   :  { %4480 = vst [vmem:[#allocation6_spill] sm:$0xff] %v3670_v53  ;;  %1165 = vadd.xlane.f32.xlu0 %v1164_v55  ;;  %v842_v31 = vpop.f32.mrb[24].mxu1  ;;  %v1308_v14 = vadd.f32 %v1307_v15, %v1239_v50  ;;  %v1241_v19 = vmul.f32 %v3670_v53, %v3670_v53 }
 0x17a   :  { %4481 = vst [vmem:[#allocation7_spill] sm:$0xff] %v3676_v8  ;;  %v1051_v40 = vpop.f32.mrb[24].mxu0  ;;  %v844_v47 = vpop.f32.mrb[25].mxu1  ;;  %v1167_v11 = vsel %vm1122_vm1, %v3676_v8, 0.0  ;;  %v1242_v13 = vmul.f32 %v3676_v8, %v3676_v8 }
 0x17b   :  { %v3685_v1 = vadd.f32 %v1051_v40, %v842_v31  ;;  %v1053_v56 = vpop.f32.mrb[25].mxu0  ;;  %1305 = vadd.xlane.f32.xlu1 %v1304_v10  ;;  %v1168_v20 = vadd.f32 %v3670_v53, %v1167_v11 }
 0x17c   :  { %v3687_v41 = vadd.f32 %v1053_v56, %v844_v47  ;;  %v1311_v25 = vsel %vm1122_vm1, %v1242_v13, 0.0 }
 0x17d   :  { %4482 = vst [vmem:[#allocation8_spill] sm:$0xff] %v3685_v1  ;;  %1309 = vadd.xlane.f32.xlu0 %v1308_v14  ;;  %v848_v17 = vpop.f32.mrb[26].mxu1  ;;  %v1312_v12 = vadd.f32 %v1311_v25, %v1241_v19  ;;  %v1243_v43 = vmul.f32 %v3685_v1, %v3685_v1 }
 0x17e   :  { %4483 = vst [vmem:[#allocation9_spill] sm:$0xff] %v3687_v41  ;;  %v1057_v44 = vpop.f32.mrb[26].mxu0  ;;  %v850_v54 = vpop.f32.mrb[27].mxu1  ;;  %v1171_v24 = vsel %vm1122_vm1, %v3687_v41, 0.0  ;;  %v1244_v32 = vmul.f32 %v3687_v41, %v3687_v41 }
 0x17f   :  { %v3695_v49 = vadd.f32 %v1057_v44, %v848_v17  ;;  %v1059_v2 = vpop.f32.mrb[27].mxu0  ;;  %1169 = vadd.xlane.f32.xlu1 %v1168_v20  ;;  %v1172_v48 = vadd.f32 %v3685_v1, %v1171_v24 }
 0x180   :  { %v3700_v33 = vadd.f32 %v1059_v2, %v850_v54  ;;  %v1315_v42 = vsel %vm1122_vm1, %v1244_v32, 0.0 }
 0x181   :  { %4484 = vst [vmem:[#allocation10_spill] sm:$0xff] %v3695_v49  ;;  %1173 = vadd.xlane.f32.xlu0 %v1172_v48  ;;  %v854_v59 = vpop.f32.mrb[28].mxu1  ;;  %v1316_v62 = vadd.f32 %v1315_v42, %v1243_v43  ;;  %v1245_v11 = vmul.f32 %v3695_v49, %v3695_v49 }
 0x182   :  { %4485 = vst [vmem:[#allocation11_spill] sm:$0xff] %v3700_v33  ;;  %v1063_v18 = vpop.f32.mrb[28].mxu0  ;;  %v856_v0 = vpop.f32.mrb[29].mxu1  ;;  %v1175_v52 = vsel %vm1122_vm1, %v3700_v33, 0.0  ;;  %v1246_v7 = vmul.f32 %v3700_v33, %v3700_v33 }
 0x183   :  { %v3709_v21 = vadd.f32 %v1063_v18, %v854_v59  ;;  %v1065_v36 = vpop.f32.mrb[29].mxu0  ;;  %1313 = vadd.xlane.f32.xlu1 %v1312_v12  ;;  %v1176_v55 = vadd.f32 %v3695_v49, %v1175_v52 }
 0x184   :  { %v3711_v45 = vadd.f32 %v1065_v36, %v856_v0  ;;  %v1319_v31 = vsel %vm1122_vm1, %v1246_v7, 0.0 }
 0x185   :  { %4486 = vst [vmem:[#allocation12_spill] sm:$0xff] %v3709_v21  ;;  %1317 = vadd.xlane.f32.xlu0 %v1316_v62  ;;  %v860_v5 = vpop.f32.mrb[30].mxu1  ;;  %v1320_v17 = vadd.f32 %v1319_v31, %v1245_v11  ;;  %v1247_v20 = vmul.f32 %v3709_v21, %v3709_v21 }
 0x186   :  { %4487 = vst [vmem:[#allocation13_spill] sm:$0xff] %v3711_v45  ;;  %v1069_v61 = vpop.f32.mrb[30].mxu0  ;;  %v862_v3 = vpop.f32.mrb[31].mxu1  ;;  %v1179_v15 = vsel %vm1122_vm1, %v3711_v45, 0.0  ;;  %v1248_v10 = vmul.f32 %v3711_v45, %v3711_v45 }
 0x187   :  { %v3719_v50 = vadd.f32 %v1069_v61, %v860_v5  ;;  %v1071_v40 = vpop.f32.mrb[31].mxu0  ;;  %1177 = vadd.xlane.f32.xlu1 %v1176_v55  ;;  %v1180_v47 = vadd.f32 %v3709_v21, %v1179_v15 }
 0x188   :  { %v3724_v13 = vadd.f32 %v1071_v40, %v862_v3  ;;  %v1323_v56 = vsel %vm1122_vm1, %v1248_v10, 0.0 }
 0x189   :  { %4488 = vst [vmem:[#allocation14_spill] sm:$0xff] %v3719_v50  ;;  %1181 = vadd.xlane.f32.xlu0 %v1180_v47  ;;  %v866_v14 = vpop.f32.mrb[32].mxu1  ;;  %v1324_v48 = vadd.f32 %v1323_v56, %v1247_v20  ;;  %v1249_v5 = vmul.f32 %v3719_v50, %v3719_v50 }
 0x18a   :  { %4489 = vst [vmem:[#allocation15_spill] sm:$0xff] %v3724_v13  ;;  %v1075_v44 = vpop.f32.mrb[32].mxu0  ;;  %v868_v54 = vpop.f32.mrb[33].mxu1  ;;  %v1183_v24 = vsel %vm1122_vm1, %v3724_v13, 0.0  ;;  %v1250_v25 = vmul.f32 %v3724_v13, %v3724_v13 }
 0x18b   :  { %v3733_v32 = vadd.f32 %v1075_v44, %v866_v14  ;;  %v1077_v2 = vpop.f32.mrb[33].mxu0  ;;  %1321 = vadd.xlane.f32.xlu1 %v1320_v17  ;;  %v1184_v59 = vadd.f32 %v3719_v50, %v1183_v24 }
 0x18c   :  { %v3735_v19 = vadd.f32 %v1077_v2, %v868_v54  ;;  %v1327_v0 = vsel %vm1122_vm1, %v1250_v25, 0.0 }
 0x18d   :  { %4490 = vst [vmem:[#allocation16_spill] sm:$0xff] %v3733_v32  ;;  %1325 = vadd.xlane.f32.xlu0 %v1324_v48  ;;  %v872_v42 = vpop.f32.mrb[34].mxu1  ;;  %v1328_v15 = vadd.f32 %v1327_v0, %v1249_v5  ;;  %v1251_v31 = vmul.f32 %v3733_v32, %v3733_v32 }
 0x18e   :  { %4491 = vst [vmem:[#allocation17_spill] sm:$0xff] %v3735_v19  ;;  %v1081_v12 = vpop.f32.mrb[34].mxu0  ;;  %v874_v43 = vpop.f32.mrb[35].mxu1  ;;  %v1187_v18 = vsel %vm1122_vm1, %v3735_v19, 0.0  ;;  %v1252_v52 = vmul.f32 %v3735_v19, %v3735_v19 }
 0x18f   :  { %v3743_v7 = vadd.f32 %v1081_v12, %v872_v42  ;;  %v1083_v36 = vpop.f32.mrb[35].mxu0  ;;  %1185 = vadd.xlane.f32.xlu1 %v1184_v59  ;;  %v1188_v62 = vadd.f32 %v3733_v32, %v1187_v18 }
 0x190   :  { %v3748_v55 = vadd.f32 %v1083_v36, %v874_v43  ;;  %v1331_v61 = vsel %vm1122_vm1, %v1252_v52, 0.0 }
 0x191   :  { %4492 = vst [vmem:[#allocation18_spill] sm:$0xff] %v3743_v7  ;;  %1189 = vadd.xlane.f32.xlu0 %v1188_v62  ;;  %v878_v3 = vpop.f32.mrb[36].mxu1  ;;  %v1332_v17 = vadd.f32 %v1331_v61, %v1251_v31  ;;  %v1253_v18 = vmul.f32 %v3743_v7, %v3743_v7 }
 0x192   :  { %4493 = vst [vmem:[#allocation19_spill] sm:$0xff] %v3748_v55  ;;  %v1087_v10 = vpop.f32.mrb[36].mxu0  ;;  %v880_v40 = vpop.f32.mrb[37].mxu1  ;;  %v1191_v47 = vsel %vm1122_vm1, %v3748_v55, 0.0  ;;  %v1254_v11 = vmul.f32 %v3748_v55, %v3748_v55 }
 0x193   :  { %v3757_v56 = vadd.f32 %v1087_v10, %v878_v3  ;;  %v1089_v14 = vpop.f32.mrb[37].mxu0  ;;  %1329 = vadd.xlane.f32.xlu1 %v1328_v15  ;;  %v1192_v54 = vadd.f32 %v3743_v7, %v1191_v47 }
 0x194   :  { %v3759_v20 = vadd.f32 %v1089_v14, %v880_v40  ;;  %v1335_v48 = vsel %vm1122_vm1, %v1254_v11, 0.0 }
 0x195   :  { %4494 = vst [vmem:[#allocation20_spill] sm:$0xff] %v3757_v56  ;;  %1333 = vadd.xlane.f32.xlu0 %v1332_v17  ;;  %v884_v44 = vpop.f32.mrb[38].mxu1  ;;  %v1336_v62 = vadd.f32 %v1335_v48, %v1253_v18  ;;  %v1255_v5 = vmul.f32 %v3757_v56, %v3757_v56 }
 0x196   :  { %4495 = vst [vmem:[#allocation21_spill] sm:$0xff] %v3759_v20  ;;  %v1093_v24 = vpop.f32.mrb[38].mxu0  ;;  %v886_v25 = vpop.f32.mrb[39].mxu1  ;;  %v1195_v2 = vsel %vm1122_vm1, %v3759_v20, 0.0  ;;  %v1256_v42 = vmul.f32 %v3759_v20, %v3759_v20 }
 0x197   :  { %v3767_v59 = vadd.f32 %v1093_v24, %v884_v44  ;;  %v1095_v12 = vpop.f32.mrb[39].mxu0  ;;  %1193 = vadd.xlane.f32.xlu1 %v1192_v54  ;;  %v1196_v43 = vadd.f32 %v3757_v56, %v1195_v2 }
 0x198   :  { %v3772_v0 = vadd.f32 %v1095_v12, %v886_v25  ;;  %v1339_v52 = vsel %vm1122_vm1, %v1256_v42, 0.0 }
 0x199   :  { %4496 = vst [vmem:[#allocation22_spill] sm:$0xff] %v3767_v59  ;;  %1197 = vadd.xlane.f32.xlu0 %v1196_v43  ;;  %v890_v36 = vpop.f32.mrb[40].mxu1  ;;  %v1340_v47 = vadd.f32 %v1339_v52, %v1255_v5  ;;  %v1257_v43 = vmul.f32 %v3767_v59, %v3767_v59 }
 0x19a   :  { %4497 = vst [vmem:[#allocation23_spill] sm:$0xff] %v3772_v0  ;;  %v1099_v61 = vpop.f32.mrb[40].mxu0  ;;  %v892_v3 = vpop.f32.mrb[41].mxu1  ;;  %v1199_v15 = vsel %vm1122_vm1, %v3772_v0, 0.0  ;;  %v1258_v31 = vmul.f32 %v3772_v0, %v3772_v0 }
 0x19b   :  { %v3781_v10 = vadd.f32 %v1099_v61, %v890_v36  ;;  %v1101_v40 = vpop.f32.mrb[41].mxu0  ;;  %1337 = vadd.xlane.f32.xlu1 %v1336_v62  ;;  %v1200_v17 = vadd.f32 %v3767_v59, %v1199_v15 }
 0x19c   :  { %v3783_v11 = vadd.f32 %v1101_v40, %v892_v3  ;;  %v1343_v25 = vsel %vm1122_vm1, %v1258_v31, 0.0 }
 0x19d   :  { %4498 = vst [vmem:[#allocation24_spill] sm:$0xff] %v3781_v10  ;;  %1341 = vadd.xlane.f32.xlu0 %v1340_v47  ;;  %v896_v14 = vpop.f32.mrb[42].mxu1  ;;  %v1344_v62 = vadd.f32 %v1343_v25, %v1257_v43  ;;  %v1259_v5 = vmul.f32 %v3781_v10, %v3781_v10 }
 0x19e   :  { %4499 = vst [vmem:[#allocation25_spill] sm:$0xff] %v3783_v11  ;;  %v1105_v44 = vpop.f32.mrb[42].mxu0  ;;  %v898_v54 = vpop.f32.mrb[43].mxu1  ;;  %v1203_v24 = vsel %vm1122_vm1, %v3783_v11, 0.0  ;;  %v1260_v2 = vmul.f32 %v3783_v11, %v3783_v11 }
 0x19f   :  { %v3791_v48 = vadd.f32 %v1105_v44, %v896_v14  ;;  %v1107_v42 = vpop.f32.mrb[43].mxu0  ;;  %1201 = vadd.xlane.f32.xlu1 %v1200_v17  ;;  %v1204_v12 = vadd.f32 %v3781_v10, %v1203_v24 }
 0x1a0   :  { %v3796_v18 = vadd.f32 %v1107_v42, %v898_v54  ;;  %v1347_v52 = vsel %vm1122_vm1, %v1260_v2, 0.0 }
 0x1a1   :  { %4500 = vst [vmem:[#allocation26_spill] sm:$0xff] %v3791_v48  ;;  %1205 = vadd.xlane.f32.xlu0 %v1204_v12  ;;  %v902_v36 = vpop.f32.mrb[44].mxu1  ;;  %v1348_v14 = vadd.f32 %v1347_v52, %v1259_v5 }
 0x1a2   :  { %4501 = vst [vmem:[#allocation27_spill] sm:$0xff] %v3796_v18  ;;  %v1111_v61 = vpop.f32.mrb[44].mxu0  ;;  %v904_v3 = vpop.f32.mrb[45].mxu1  ;;  %v1207_v15 = vsel %vm1122_vm1, %v3796_v18, 0.0  ;;  %v1262_v31 = vmul.f32 %v3796_v18, %v3796_v18 }
 0x1a3   :  { %v3805_v40 = vadd.f32 %v1111_v61, %v902_v36  ;;  %v1113_v47 = vpop.f32.mrb[45].mxu0  ;;  %1345 = vadd.xlane.f32.xlu1 %v1344_v62  ;;  %v1208_v54 = vadd.f32 %v3791_v48, %v1207_v15  ;;  %v1261_v62 = vmul.f32 %v3791_v48, %v3791_v48 }
 0x1a4   :  { %v3807_v17 = vadd.f32 %v1113_v47, %v904_v3  ;;  %v1351_v42 = vsel %vm1122_vm1, %v1262_v31, 0.0 }
 0x1a5   :  { %4502 = vst [vmem:[#allocation28_spill] sm:$0xff] %v3805_v40  ;;  %1349 = vadd.xlane.f32.xlu0 %v1348_v14  ;;  %v908_v44 = vpop.f32.mrb[46].mxu1  ;;  %v1352_v3 = vadd.f32 %v1351_v42, %v1261_v62  ;;  %v1263_v15 = vmul.f32 %v3805_v40, %v3805_v40 }
 0x1a6   :  { %4503 = vst [vmem:[#allocation29_spill] sm:$0xff] %v3807_v17  ;;  %v1117_v24 = vpop.f32.mrb[46].mxu0  ;;  %v910_v25 = vpop.f32.mrb[47].mxu1  ;;  %v1211_v2 = vsel %vm1122_vm1, %v3807_v17, 0.0  ;;  %v1264_v12 = vmul.f32 %v3807_v17, %v3807_v17 }
 0x1a7   :  { %v3815_v43 = vadd.f32 %v1117_v24, %v908_v44  ;;  %v1119_v36 = vpop.f32.mrb[47].mxu0  ;;  %1209 = vadd.xlane.f32.xlu1 %v1208_v54  ;;  %v1212_v52 = vadd.f32 %v3805_v40, %v1211_v2 }
 0x1a8   :  { %v3820_v5 = vadd.f32 %v1119_v36, %v910_v25  ;;  %v1355_v61 = vsel %vm1122_vm1, %v1264_v12, 0.0 }
 0x1a9   :  { %4504 = vst [vmem:[#allocation30_spill] sm:$0xff] %v3815_v43  ;;  %1213 = vadd.xlane.f32.xlu0 %v1212_v52  ;;  %v1356_v14 = vadd.f32 %v1355_v61, %v1263_v15  ;;  %v1265_v24 = vmul.f32 %v3815_v43, %v3815_v43 }
 0x1aa   :  { %4505 = vst [vmem:[#allocation31_spill] sm:$0xff] %v3820_v5  ;;  %v1215_v31 = vsel %vm1122_vm1, %v3820_v5, 0.0  ;;  %v1266_v47 = vmul.f32 %v3820_v5, %v3820_v5 }
 0x1ab   :  { %1353 = vadd.xlane.f32.xlu1 %v1352_v3  ;;  %v1216_v44 = vadd.f32 %v3815_v43, %v1215_v31 }
 0x1ac   :  { %v1359_v54 = vsel %vm1122_vm1, %v1266_v47, 0.0 }
 0x1ad   :  { %1357 = vadd.xlane.f32.xlu0 %v1356_v14  ;;  %v1360_v25 = vadd.f32 %v1359_v54, %v1265_v24 }
 0x1af   :  { %1217 = vadd.xlane.f32.xlu1 %v1216_v44 }
 0x1b3   :  { %1361 = vadd.xlane.f32.xlu1 %v1360_v25 }
 0x1de   :  { %v1126_v2 = vpop.xlane.xlu0 %1125 }
 0x1df   :  { %v1363_v42 = vmul.f32 0.0051020407, %v1126_v2 }
 0x1e1   :  { %v1411_v36 = vmul.f32 %v1363_v42, %v1363_v42 }
 0x1e2   :  { %v1270_v12 = vpop.xlane.xlu0 %1269 }
 0x1e3   :  { %v1387_v52 = vmul.f32 0.0051020407, %v1270_v12 }
 0x1e4   :  { %v1274_v62 = vpop.xlane.xlu1 %1273 }
 0x1e5   :  { %v1435_v5 = vsub.f32 %v1387_v52, %v1411_v36  ;;  %v1388_v47 = vmul.f32 0.0051020407, %v1274_v62 }
 0x1e6   :  { %v1130_v3 = vpop.xlane.xlu0 %1129 }
 0x1e7   :  { %v1459_v61 = vmax.f32 %v1435_v5, 0.0  ;;  %v3833_v15 = vmul.f32 0.0051020407, %v1130_v3 }
 0x1e8   :  { %v1134_v31 = vpop.xlane.xlu1 %1133 }
 0x1e9   :  { %v1483_v14 = vadd.f32 1e-05, %v1459_v61  ;;  %v1412_v44 = vmul.f32 %v3833_v15, %v3833_v15  ;;  %v3837_v43 = vmul.f32 0.0051020407, %v1134_v31 }
 0x1ea   :  { %v1278_v54 = vpop.xlane.xlu0 %1277 }
 0x1eb   :  { %2463 = vrsqrt.f32 %v1483_v14  ;;  %v1436_v24 = vsub.f32 %v1388_v47, %v1412_v44  ;;  %v1413_v25 = vmul.f32 %v3837_v43, %v3837_v43  ;;  %v1389_v2 = vmul.f32 0.0051020407, %v1278_v54 }
 0x1ec   :  { %v1138_v12 = vpop.xlane.xlu1 %1137 }
 0x1ed   :  { %v1460_v36 = vmax.f32 %v1436_v24, 0.0  ;;  %v1437_v5 = vsub.f32 %v1389_v2, %v1413_v25  ;;  %v3841_v52 = vmul.f32 0.0051020407, %v1138_v12  ;;  %v3852_v2 = vld [vmem:[%s4444_s2] sm:$0xff] }
 0x1ee   :  { %v1142_v3 = vpop.xlane.xlu0 %1141 }
 0x1ef   :  { %v1484_v61 = vadd.f32 1e-05, %v1460_v36  ;;  %v1461_v62 = vmax.f32 %v1437_v5, 0.0  ;;  %v3843_v18 = vmul.f32 0.0051020407, %v1142_v3  ;;  %v1414_v31 = vmul.f32 %v3841_v52, %v3841_v52 }
 0x1f0   :  { %v1282_v48 = vpop.xlane.xlu1 %1281 }
 0x1f1   :  { %2465 = vrsqrt.f32 %v1484_v61  ;;  %v1390_v14 = vmul.f32 0.0051020407, %v1282_v48  ;;  %v1485_v44 = vadd.f32 1e-05, %v1461_v62  ;;  %v1415_v54 = vmul.f32 %v3843_v18, %v3843_v18 }
 0x1f2   :  { %v1286_v47 = vpop.xlane.xlu0 %1285 }
 0x1f3   :  { %v1438_v24 = vsub.f32 %v1390_v14, %v1414_v31  ;;  %v1391_v25 = vmul.f32 0.0051020407, %v1286_v47  ;;  %2467 = vrsqrt.f32 %v1485_v44  ;;  %v3862_v14 = vld [vmem:[%s4444_s2 + $0x8] sm:$0xff] }
 0x1f4   :  { %v1146_v12 = vpop.xlane.xlu1 %1145 }
 0x1f5   :  { %v2464_v36 = vpop.eup %2463  ;;  %v1462_v5 = vmax.f32 %v1438_v24, 0.0  ;;  %v1439_v3 = vsub.f32 %v1391_v25, %v1415_v54  ;;  %v3854_v61 = vmul.f32 0.0051020407, %v1146_v12 }
 0x1f6   :  { %v1150_v0 = vpop.xlane.xlu0 %1149  ;;  %v1555_v48 = vmul.f32 %v2464_v36, %v3852_v2 }
 0x1f7   :  { %v1486_v62 = vadd.f32 1e-05, %v1462_v5  ;;  %v1463_v59 = vmax.f32 %v1439_v3, 0.0  ;;  %v3857_v17 = vmul.f32 0.0051020407, %v1150_v0  ;;  %v1416_v54 = vmul.f32 %v3854_v61, %v3854_v61 }
 0x1f8   :  { %v1290_v31 = vpop.xlane.xlu1 %1289  ;;  %1725 = vperm.xlu0 %2459, %v1555_v48   ;;  %v1579_v12 = vmul.f32 %v1555_v48, %v1363_v42 }
 0x1f9   :  { %2469 = vrsqrt.f32 %v1486_v62  ;;  %v1487_v47 = vadd.f32 1e-05, %v1463_v59  ;;  %v1392_v24 = vmul.f32 0.0051020407, %v1290_v31  ;;  %v1417_v0 = vmul.f32 %v3857_v17, %v3857_v17 }
 0x1fa   :  { %v1294_v25 = vpop.xlane.xlu0 %1293 }
 0x1fb   :  { %v2466_v44 = vpop.eup %2465  ;;  %2471 = vrsqrt.f32 %v1487_v47  ;;  %v1440_v36 = vsub.f32 %v1392_v24, %v1416_v54  ;;  %v1393_v5 = vmul.f32 0.0051020407, %v1294_v25 }
 0x1fc   :  { %v1556_v3 = vmul.f32 %v2466_v44, %v3862_v14  ;;  %v1154_v40 = vpop.xlane.xlu1 %1153  ;;  %1627 = vrot.lane.b32.xlu0 %v1579_v12, %s2513_s22 }
 0x1fd   :  { %v1464_v59 = vmax.f32 %v1440_v36, 0.0  ;;  %v1441_v62 = vsub.f32 %v1393_v5, %v1417_v0  ;;  %v3870_v11 = vmul.f32 0.0051020407, %v1154_v40  ;;  %v2468_v24 = vpop.eup %2467  ;;  %v3880_v40 = vld [vmem:[%s4444_s2 + $0x18] sm:$0xff]  ;;  %v3885_v0 = vld [vmem:[%s4444_s2 + $0x10] sm:$0xff] }
 0x1fe   :  { %v1158_v31 = vpop.xlane.xlu0 %1157  ;;  %1730 = vperm.xlu1 %2460, %v1556_v3   ;;  %v1580_v10 = vmul.f32 %v1556_v3, %v3833_v15 }
 0x1ff   :  { %v1488_v42 = vadd.f32 1e-05, %v1464_v59  ;;  %v1465_v48 = vmax.f32 %v1441_v62, 0.0  ;;  %v3872_v47 = vmul.f32 0.0051020407, %v1158_v31  ;;  %v1418_v44 = vmul.f32 %v3870_v11, %v3870_v11  ;;  %v3893_v62 = vld [vmem:[%s4444_s2 + $0x20] sm:$0xff] }
 0x200   :  { %v1298_v54 = vpop.xlane.xlu1 %1297 }
 0x201   :  { %2473 = vrsqrt.f32 %v1488_v42  ;;  %v1489_v25 = vadd.f32 1e-05, %v1465_v48  ;;  %v1394_v12 = vmul.f32 0.0051020407, %v1298_v54  ;;  %v1419_v5 = vmul.f32 %v3872_v47, %v3872_v47 }
 0x202   :  { %v1302_v36 = vpop.xlane.xlu0 %1301  ;;  %1629 = vrot.lane.b32.xlu1 %v1580_v10, %s2513_s22  ;;  %v1557_v48 = vmul.f32 %v2468_v24, %v3885_v0 }
 0x203   :  { %v2470_v15 = vpop.eup %2469  ;;  %2475 = vrsqrt.f32 %v1489_v25  ;;  %v1442_v3 = vsub.f32 %v1394_v12, %v1418_v44  ;;  %v1395_v59 = vmul.f32 0.0051020407, %v1302_v36 }
 0x204   :  { %v1162_v31 = vpop.xlane.xlu1 %1161  ;;  %v1558_v42 = vmul.f32 %v2470_v15, %v3880_v40  ;;  %v1581_v15 = vmul.f32 %v1557_v48, %v3837_v43 }
 0x205   :  { %v2472_v54 = vpop.eup %2471  ;;  %v1466_v55 = vmax.f32 %v1442_v3, 0.0  ;;  %v1443_v10 = vsub.f32 %v1395_v59, %v1419_v5  ;;  %v3897_v7 = vmul.f32 0.0051020407, %v1162_v31  ;;  %v3909_v59 = vld [vmem:[%s4444_s2 + $0x28] sm:$0xff] }
 0x206   :  { %v1166_v25 = vpop.xlane.xlu0 %1165  ;;  %1740 = vperm.xlu0 %2459, %v1558_v42   ;;  %1735 = vperm.xlu1 %2460, %v1557_v48   ;;  %v1559_v44 = vmul.f32 %v2472_v54, %v3893_v62 }
 0x207   :  { %v1490_v12 = vadd.f32 1e-05, %v1466_v55  ;;  %v1467_v36 = vmax.f32 %v1443_v10, 0.0  ;;  %v3900_v20 = vmul.f32 0.0051020407, %v1166_v25  ;;  %v1420_v5 = vmul.f32 %v3897_v7, %v3897_v7 }
 0x208   :  { %v1306_v56 = vpop.xlane.xlu1 %1305  ;;  %v1583_v13 = vmul.f32 %v1559_v44, %v3843_v18  ;;  %v1582_v25 = vmul.f32 %v1558_v42, %v3841_v52 }
 0x209   :  { %2477 = vrsqrt.f32 %v1490_v12  ;;  %v1491_v24 = vadd.f32 1e-05, %v1467_v36  ;;  %v1396_v3 = vmul.f32 0.0051020407, %v1306_v56  ;;  %v1421_v18 = vmul.f32 %v3900_v20, %v3900_v20  ;;  %v3918_v56 = vld [vmem:[%s4444_s2 + $0x30] sm:$0xff] }
 0x20a   :  { %v1310_v55 = vpop.xlane.xlu0 %1309  ;;  %1635 = vrot.lane.b32.xlu0 %v1583_v13, %s2513_s22  ;;  %1631 = vrot.lane.b32.xlu1 %v1581_v15, %s2513_s22 }
 0x20b   :  { %v2474_v31 = vpop.eup %2473  ;;  %2479 = vrsqrt.f32 %v1491_v24  ;;  %v1444_v43 = vsub.f32 %v1396_v3, %v1420_v5  ;;  %v1397_v48 = vmul.f32 0.0051020407, %v1310_v55 }
 0x20c   :  { %v1170_v54 = vpop.xlane.xlu1 %1169  ;;  %v1560_v10 = vmul.f32 %v2474_v31, %v3909_v59 }
 0x20d   :  { %v2476_v13 = vpop.eup %2475  ;;  %v1468_v12 = vmax.f32 %v1444_v43, 0.0  ;;  %v1445_v36 = vsub.f32 %v1397_v48, %v1421_v18  ;;  %v3922_v15 = vmul.f32 0.0051020407, %v1170_v54  ;;  %v3934_v43 = vld [vmem:[%s4444_s2 + $0x38] sm:$0xff] }
 0x20e   :  { %v1174_v24 = vpop.xlane.xlu0 %1173  ;;  %1750 = vperm.xlu0 %2459, %v1560_v10   ;;  %1633 = vrot.lane.b32.xlu1 %v1582_v25, %s2513_s22  ;;  %v1561_v5 = vmul.f32 %v2476_v13, %v3918_v56 }
 0x20f   :  { %v1492_v3 = vadd.f32 1e-05, %v1468_v12  ;;  %v1469_v55 = vmax.f32 %v1445_v36, 0.0  ;;  %v3926_v50 = vmul.f32 0.0051020407, %v1174_v24  ;;  %v1422_v42 = vmul.f32 %v3922_v15, %v3922_v15 }
 0x210   :  { %v1314_v19 = vpop.xlane.xlu1 %1313  ;;  %v1585_v31 = vmul.f32 %v1561_v5, %v3857_v17  ;;  %v1584_v24 = vmul.f32 %v1560_v10, %v3854_v61 }
 0x211   :  { %2481 = vrsqrt.f32 %v1492_v3  ;;  %v1493_v52 = vadd.f32 1e-05, %v1469_v55  ;;  %v1398_v18 = vmul.f32 0.0051020407, %v1314_v19  ;;  %v1423_v17 = vmul.f32 %v3926_v50, %v3926_v50  ;;  %v3942_v19 = vld [vmem:[%s4444_s2 + $0x40] sm:$0xff] }
 0x212   :  { %v1318_v48 = vpop.xlane.xlu0 %1317  ;;  %1639 = vrot.lane.b32.xlu0 %v1585_v31, %s2513_s22  ;;  %1745 = vperm.xlu1 %2460, %v1559_v44  }
 0x213   :  { %v2478_v54 = vpop.eup %2477  ;;  %2483 = vrsqrt.f32 %v1493_v52  ;;  %v1446_v25 = vsub.f32 %v1398_v18, %v1422_v42  ;;  %v1399_v13 = vmul.f32 0.0051020407, %v1318_v48 }
 0x214   :  { %v1178_v12 = vpop.xlane.xlu1 %1177  ;;  %v1562_v36 = vmul.f32 %v2478_v54, %v3934_v43 }
 0x215   :  { %v2480_v3 = vpop.eup %2479  ;;  %v1470_v55 = vmax.f32 %v1446_v25, 0.0  ;;  %v1447_v44 = vsub.f32 %v1399_v13, %v1423_v17  ;;  %v3946_v31 = vmul.f32 0.0051020407, %v1178_v12  ;;  %v3958_v25 = vld [vmem:[%s4444_s2 + $0x48] sm:$0xff] }
 0x216   :  { %v1182_v52 = vpop.xlane.xlu0 %1181  ;;  %1760 = vperm.xlu0 %2459, %v1562_v36   ;;  %1637 = vrot.lane.b32.xlu1 %v1584_v24, %s2513_s22  ;;  %v1563_v42 = vmul.f32 %v2480_v3, %v3942_v19 }
 0x217   :  { %v1494_v18 = vadd.f32 1e-05, %v1470_v55  ;;  %v1471_v48 = vmax.f32 %v1447_v44, 0.0  ;;  %v3950_v32 = vmul.f32 0.0051020407, %v1182_v52  ;;  %v1424_v10 = vmul.f32 %v3946_v31, %v3946_v31 }
 0x218   :  { %v1322_v33 = vpop.xlane.xlu1 %1321  ;;  %v1587_v54 = vmul.f32 %v1563_v42, %v3872_v47  ;;  %v1586_v52 = vmul.f32 %v1562_v36, %v3870_v11 }
 0x219   :  { %2485 = vrsqrt.f32 %v1494_v18  ;;  %v1495_v61 = vadd.f32 1e-05, %v1471_v48  ;;  %v1400_v17 = vmul.f32 0.0051020407, %v1322_v33  ;;  %v1425_v47 = vmul.f32 %v3950_v32, %v3950_v32  ;;  %v3966_v33 = vld [vmem:[%s4444_s2 + $0x50] sm:$0xff] }
 0x21a   :  { %v1326_v13 = vpop.xlane.xlu0 %1325  ;;  %1643 = vrot.lane.b32.xlu0 %v1587_v54, %s2513_s22  ;;  %1755 = vperm.xlu1 %2460, %v1561_v5  }
 0x21b   :  { %v2482_v12 = vpop.eup %2481  ;;  %2487 = vrsqrt.f32 %v1495_v61  ;;  %v1448_v24 = vsub.f32 %v1400_v17, %v1424_v10  ;;  %v1401_v3 = vmul.f32 0.0051020407, %v1326_v13 }
 0x21c   :  { %v1186_v55 = vpop.xlane.xlu1 %1185  ;;  %v1564_v44 = vmul.f32 %v2482_v12, %v3958_v25 }
 0x21d   :  { %v2484_v18 = vpop.eup %2483  ;;  %v1472_v48 = vmax.f32 %v1448_v24, 0.0  ;;  %v1449_v5 = vsub.f32 %v1401_v3, %v1425_v47  ;;  %v3970_v54 = vmul.f32 0.0051020407, %v1186_v55  ;;  %v3982_v24 = vld [vmem:[%s4444_s2 + $0x58] sm:$0xff] }
 0x21e   :  { %v1190_v61 = vpop.xlane.xlu0 %1189  ;;  %1770 = vperm.xlu0 %2459, %v1564_v44   ;;  %1641 = vrot.lane.b32.xlu1 %v1586_v52, %s2513_s22  ;;  %v1565_v10 = vmul.f32 %v2484_v18, %v3966_v33 }
 0x21f   :  { %v1496_v17 = vadd.f32 1e-05, %v1472_v48  ;;  %v1473_v13 = vmax.f32 %v1449_v5, 0.0  ;;  %v3974_v49 = vmul.f32 0.0051020407, %v1190_v61  ;;  %v1426_v36 = vmul.f32 %v3970_v54, %v3970_v54 }
 0x220   :  { %v1330_v45 = vpop.xlane.xlu1 %1329  ;;  %v1589_v12 = vmul.f32 %v1565_v10, %v3900_v20  ;;  %v1588_v61 = vmul.f32 %v1564_v44, %v3897_v7 }
 0x221   :  { %2489 = vrsqrt.f32 %v1496_v17  ;;  %v1497_v11 = vadd.f32 1e-05, %v1473_v13  ;;  %v1402_v47 = vmul.f32 0.0051020407, %v1330_v45  ;;  %v1427_v20 = vmul.f32 %v3974_v49, %v3974_v49  ;;  %v3990_v45 = vld [vmem:[%s4444_s2 + $0x60] sm:$0xff] }
 0x222   :  { %v1334_v3 = vpop.xlane.xlu0 %1333  ;;  %1647 = vrot.lane.b32.xlu0 %v1589_v12, %s2513_s22  ;;  %1765 = vperm.xlu1 %2460, %v1563_v42  }
 0x223   :  { %v2486_v55 = vpop.eup %2485  ;;  %2491 = vrsqrt.f32 %v1497_v11  ;;  %v1450_v52 = vsub.f32 %v1402_v47, %v1426_v36  ;;  %v1403_v18 = vmul.f32 0.0051020407, %v1334_v3 }
 0x224   :  { %v1194_v48 = vpop.xlane.xlu1 %1193  ;;  %v1566_v5 = vmul.f32 %v2486_v55, %v3982_v24 }
 0x225   :  { %v2488_v17 = vpop.eup %2487  ;;  %v1474_v13 = vmax.f32 %v1450_v52, 0.0  ;;  %v1451_v42 = vsub.f32 %v1403_v18, %v1427_v20  ;;  %v3994_v12 = vmul.f32 0.0051020407, %v1194_v48  ;;  %v4006_v52 = vld [vmem:[%s4444_s2 + $0x68] sm:$0xff] }
 0x226   :  { %v1198_v11 = vpop.xlane.xlu0 %1197  ;;  %1780 = vperm.xlu0 %2459, %v1566_v5   ;;  %1645 = vrot.lane.b32.xlu1 %v1588_v61, %s2513_s22  ;;  %v1567_v36 = vmul.f32 %v2488_v17, %v3990_v45 }
 0x227   :  { %v1498_v47 = vadd.f32 1e-05, %v1474_v13  ;;  %v1475_v3 = vmax.f32 %v1451_v42, 0.0  ;;  %v3998_v21 = vmul.f32 0.0051020407, %v1198_v11  ;;  %v1428_v44 = vmul.f32 %v3994_v12, %v3994_v12 }
 0x228   :  { %v1338_v8 = vpop.xlane.xlu1 %1337  ;;  %v1591_v55 = vmul.f32 %v1567_v36, %v3926_v50  ;;  %v1590_v11 = vmul.f32 %v1566_v5, %v3922_v15 }
 0x229   :  { %2493 = vrsqrt.f32 %v1498_v47  ;;  %v1499_v7 = vadd.f32 1e-05, %v1475_v3  ;;  %v1404_v20 = vmul.f32 0.0051020407, %v1338_v8  ;;  %v1429_v50 = vmul.f32 %v3998_v21, %v3998_v21  ;;  %v4014_v8 = vld [vmem:[%s4444_s2 + $0x70] sm:$0xff] }
 0x22a   :  { %v1342_v18 = vpop.xlane.xlu0 %1341  ;;  %1651 = vrot.lane.b32.xlu0 %v1591_v55, %s2513_s22  ;;  %1775 = vperm.xlu1 %2460, %v1565_v10  }
 0x22b   :  { %v2490_v48 = vpop.eup %2489  ;;  %2495 = vrsqrt.f32 %v1499_v7  ;;  %v1452_v61 = vsub.f32 %v1404_v20, %v1428_v44  ;;  %v1405_v17 = vmul.f32 0.0051020407, %v1342_v18 }
 0x22c   :  { %v1202_v13 = vpop.xlane.xlu1 %1201  ;;  %v1568_v42 = vmul.f32 %v2490_v48, %v4006_v52 }
 0x22d   :  { %v2492_v47 = vpop.eup %2491  ;;  %v1476_v3 = vmax.f32 %v1452_v61, 0.0  ;;  %v1453_v10 = vsub.f32 %v1405_v17, %v1429_v50  ;;  %v4018_v55 = vmul.f32 0.0051020407, %v1202_v13  ;;  %v4030_v61 = vld [vmem:[%s4444_s2 + $0x78] sm:$0xff] }
 0x22e   :  { %v1206_v7 = vpop.xlane.xlu0 %1205  ;;  %1790 = vperm.xlu0 %2459, %v1568_v42   ;;  %1649 = vrot.lane.b32.xlu1 %v1590_v11, %s2513_s22  ;;  %v1569_v44 = vmul.f32 %v2492_v47, %v4014_v8 }
 0x22f   :  { %v1500_v20 = vadd.f32 1e-05, %v1476_v3  ;;  %v1477_v18 = vmax.f32 %v1453_v10, 0.0  ;;  %v4022_v53 = vmul.f32 0.0051020407, %v1206_v7  ;;  %v1430_v5 = vmul.f32 %v4018_v55, %v4018_v55 }
 0x230   :  { %v1346_v41 = vpop.xlane.xlu1 %1345  ;;  %v1593_v48 = vmul.f32 %v1569_v44, %v3950_v32  ;;  %v1592_v7 = vmul.f32 %v1568_v42, %v3946_v31 }
 0x231   :  { %2497 = vrsqrt.f32 %v1500_v20  ;;  %v1501_v15 = vadd.f32 1e-05, %v1477_v18  ;;  %v1406_v50 = vmul.f32 0.0051020407, %v1346_v41  ;;  %v1431_v32 = vmul.f32 %v4022_v53, %v4022_v53  ;;  %v4038_v41 = vld [vmem:[%s4444_s2 + $0x80] sm:$0xff] }
 0x232   :  { %v1350_v17 = vpop.xlane.xlu0 %1349  ;;  %1655 = vrot.lane.b32.xlu0 %v1593_v48, %s2513_s22  ;;  %1785 = vperm.xlu1 %2460, %v1567_v36  }
 0x233   :  { %v2494_v13 = vpop.eup %2493  ;;  %2499 = vrsqrt.f32 %v1501_v15  ;;  %v1454_v11 = vsub.f32 %v1406_v50, %v1430_v5  ;;  %v1407_v47 = vmul.f32 0.0051020407, %v1350_v17 }
 0x234   :  { %v1210_v3 = vpop.xlane.xlu1 %1209  ;;  %v1570_v10 = vmul.f32 %v2494_v13, %v4030_v61 }
 0x235   :  { %v2496_v20 = vpop.eup %2495  ;;  %v1478_v18 = vmax.f32 %v1454_v11, 0.0  ;;  %v1455_v36 = vsub.f32 %v1407_v47, %v1431_v32  ;;  %v4042_v48 = vmul.f32 0.0051020407, %v1210_v3  ;;  %v4052_v32 = vld [vmem:[%s4444_s2 + $0x88] sm:$0xff] }
 0x236   :  { %1800 = vperm.xlu0 %2459, %v1570_v10   ;;  %v1214_v15 = vpop.xlane.xlu0 %1213  ;;  %1653 = vrot.lane.b32.xlu1 %v1592_v7, %s2513_s22  ;;  %v1571_v5 = vmul.f32 %v2496_v20, %v4038_v41  ;;  %v4058_v20 = vld [vmem:[%s4444_s2 + $0x90] sm:$0xff] }
 0x237   :  { %v1502_v50 = vadd.f32 1e-05, %v1478_v18  ;;  %v1479_v17 = vmax.f32 %v1455_v36, 0.0  ;;  %v1385_v1 = vmul.f32 0.0051020407, %v1214_v15  ;;  %v1432_v31 = vmul.f32 %v4042_v48, %v4042_v48 }
 0x238   :  { %v1354_v27 = vpop.xlane.xlu1 %1353  ;;  %v1595_v46 = vmul.f32 %v1571_v5, %v3974_v49  ;;  %v1594_v36 = vmul.f32 %v1570_v10, %v3970_v54  ;;  %v4069_v10 = vld [vmem:[%s4444_s2 + $0xa0] sm:$0xff] }
 0x239   :  { %v1503_v13 = vadd.f32 1e-05, %v1479_v17  ;;  %v1408_v42 = vmul.f32 0.0051020407, %v1354_v27  ;;  %2501 = vrsqrt.f32 %v1502_v50  ;;  %v1433_v3 = vmul.f32 %v1385_v1, %v1385_v1 }
 0x23a   :  { %1659 = vrot.lane.b32.xlu0 %v1595_v46, %s2513_s22  ;;  %v1358_v11 = vpop.xlane.xlu0 %1357  ;;  %1795 = vperm.xlu1 %2460, %v1569_v44  }
 0x23b   :  { %v2498_v47 = vpop.eup %2497  ;;  %2503 = vrsqrt.f32 %v1503_v13  ;;  %v1456_v7 = vsub.f32 %v1408_v42, %v1432_v31  ;;  %v1409_v49 = vmul.f32 0.0051020407, %v1358_v11 }
 0x23c   :  { %v1218_v27 = vpop.xlane.xlu1 %1217  ;;  %v1572_v18 = vmul.f32 %v2498_v47, %v4052_v32 }
 0x23d   :  { %v2500_v15 = vpop.eup %2499  ;;  %v1480_v50 = vmax.f32 %v1456_v7, 0.0  ;;  %v1457_v46 = vsub.f32 %v1409_v49, %v1433_v3  ;;  %v1386_v17 = vmul.f32 0.0051020407, %v1218_v27 }
 0x23e   :  { %1810 = vperm.xlu0 %2459, %v1572_v18   ;;  %1657 = vrot.lane.b32.xlu1 %v1594_v36, %s2513_s22  ;;  %v1573_v44 = vmul.f32 %v2500_v15, %v4058_v20  ;;  %v1596_v7 = vmul.f32 %v1572_v18, %v3994_v12  ;;  %v4084_v12 = vld [vmem:[%s4444_s2 + $0xa8] sm:$0xff]  ;;  %v4090_v15 = vld [vmem:[%s4444_s2 + $0xb0] sm:$0xff] }
 0x23f   :  { %v1504_v13 = vadd.f32 1e-05, %v1480_v50  ;;  %v1481_v31 = vmax.f32 %v1457_v46, 0.0  ;;  %v1434_v38 = vmul.f32 %v1386_v17, %v1386_v17 }
 0x240   :  { %v1362_v42 = vpop.xlane.xlu1 %1361  ;;  %v1597_v11 = vmul.f32 %v1573_v44, %v3998_v21  ;;  %v4075_v21 = vld [vmem:[%s4444_s2 + $0x98] sm:$0xff] }
 0x241   :  { %2505 = vrsqrt.f32 %v1504_v13  ;;  %v1505_v58 = vadd.f32 1e-05, %v1481_v31  ;;  %v1410_v47 = vmul.f32 0.0051020407, %v1362_v42 }
 0x242   :  { %1663 = vrot.lane.b32.xlu0 %v1597_v11, %s2513_s22  ;;  %1805 = vperm.xlu1 %2460, %v1571_v5  }
 0x243   :  { %2507 = vrsqrt.f32 %v1505_v58  ;;  %v1458_v54 = vsub.f32 %v1410_v47, %v1434_v38  ;;  %v2502_v3 = vpop.eup %2501 }
 0x244   :  { %v1574_v36 = vmul.f32 %v2502_v3, %v4075_v21 }
 0x245   :  { %v2504_v49 = vpop.eup %2503  ;;  %v1482_v27 = vmax.f32 %v1458_v54, 0.0 }
 0x246   :  { %1661 = vrot.lane.b32.xlu1 %v1596_v7, %s2513_s22  ;;  %v1575_v58 = vmul.f32 %v2504_v49, %v4069_v10  ;;  %v1598_v50 = vmul.f32 %v1574_v36, %v4018_v55 }
 0x247   :  { %v1506_v38 = vadd.f32 1e-05, %v1482_v27 }
 0x248   :  { %v1599_v5 = vmul.f32 %v1575_v58, %v4022_v53 }
 0x249   :  { %2509 = vrsqrt.f32 %v1506_v38 }
 0x24a   :  { %1667 = vrot.lane.b32.xlu0 %v1599_v5, %s2513_s22  ;;  %1815 = vperm.xlu1 %2460, %v1573_v44   ;;  %v4100_v44 = vld [vmem:[%s4444_s2 + $0xb8] sm:$0xff] }
 0x24b   :  { %v2506_v18 = vpop.eup %2505 }
 0x24c   :  { %v1576_v53 = vmul.f32 %v2506_v18, %v4084_v12 }
 0x24d   :  { %v2508_v46 = vpop.eup %2507 }
 0x24e   :  { %1665 = vrot.lane.b32.xlu1 %v1598_v50, %s2513_s22  ;;  %v1577_v13 = vmul.f32 %v2508_v46, %v4090_v15  ;;  %v1600_v42 = vmul.f32 %v1576_v53, %v4042_v48 }
 0x250   :  { %v1601_v31 = vmul.f32 %v1577_v13, %v1385_v1  ;;  %v2514_v1 = vmov 1  }
 0x252   :  { %1671 = vrot.lane.b32.xlu0 %v1601_v31, %s2513_s22  ;;  %1669 = vrot.lane.b32.xlu1 %v1600_v42, %s2513_s22 }
 0x253   :  { %v2510_v55 = vpop.eup %2509 }
 0x254   :  { %v1578_v11 = vmul.f32 %v2510_v55, %v4100_v44 }
 0x256   :  { %1820 = vperm.xlu0 %2459, %v1574_v36   ;;  %v1602_v47 = vmul.f32 %v1578_v11, %v1386_v17 }
 0x258   :  { %1673 = vrot.lane.b32.xlu1 %v1602_v47, %s2513_s22 }
 0x25a   :  { %1830 = vperm.xlu0 %2459, %v1576_v53  }
 0x25c   :  { %1825 = vperm.xlu1 %2460, %v1575_v58  }
 0x25e   :  { %1840 = vperm.xlu0 %2459, %v1578_v11  }
 0x260   :  { %1835 = vperm.xlu1 %2460, %v1577_v13  }
 0x262   :  { %2462 = vset.pattern.permute.xlu0 %v2514_v1 }
 0x264   :  { %2461 = vset.pattern.permute.xlu1 %v2514_v1 }
 0x277   :  { %v4106_v48 = vpop.permute.xlu0 %1725 }
 0x27b   :  { %v1628_v54 = vpop.permute.xlu0 %1627 }
 0x27c   :  { %v1699_v3 = vsub.f32 %v3852_v2, %v1628_v54 }
 0x27d   :  { %v4109_v7 = vpop.permute.xlu1 %1730 }
 0x27e   :  { %1893 = vperm.xlu1 %2461, %v1699_v3  }
 0x281   :  { %v1630_v49 = vpop.permute.xlu1 %1629 }
 0x282   :  { %v1700_v17 = vsub.f32 %v3862_v14, %v1630_v49 }
 0x284   :  { %1898 = vperm.xlu0 %2462, %v1700_v17  }
 0x285   :  { %v4112_v27 = vpop.permute.xlu0 %1740  ;;  %v4114_v58 = vpop.permute.xlu1 %1735 }
 0x289   :  { %v1636_v38 = vpop.permute.xlu0 %1635  ;;  %v1632_v5 = vpop.permute.xlu1 %1631 }
 0x28a   :  { %v1703_v36 = vsub.f32 %v3893_v62, %v1636_v38  ;;  %v1701_v18 = vsub.f32 %v3885_v0, %v1632_v5 }
 0x28c   :  { %1913 = vperm.xlu0 %2462, %v1703_v36   ;;  %1903 = vperm.xlu1 %2461, %v1701_v18  }
 0x28d   :  { %v4118_v2 = vpop.permute.xlu0 %1750  ;;  %v1634_v50 = vpop.permute.xlu1 %1633 }
 0x28e   :  { %v1702_v53 = vsub.f32 %v3880_v40, %v1634_v50 }
 0x290   :  { %1908 = vperm.xlu1 %2461, %v1702_v53  }
 0x291   :  { %v1640_v14 = vpop.permute.xlu0 %1639  ;;  %v4121_v46 = vpop.permute.xlu1 %1745 }
 0x292   :  { %v1705_v13 = vsub.f32 %v3918_v56, %v1640_v14 }
 0x294   :  { %1923 = vperm.xlu0 %2462, %v1705_v13  }
 0x295   :  { %v4124_v31 = vpop.permute.xlu0 %1760  ;;  %v1638_v42 = vpop.permute.xlu1 %1637 }
 0x296   :  { %v1704_v62 = vsub.f32 %v3909_v59, %v1638_v42 }
 0x298   :  { %1918 = vperm.xlu1 %2461, %v1704_v62  }
 0x299   :  { %v1644_v0 = vpop.permute.xlu0 %1643  ;;  %v4127_v55 = vpop.permute.xlu1 %1755 }
 0x29a   :  { %v1707_v11 = vsub.f32 %v3942_v19, %v1644_v0 }
 0x29c   :  { %1933 = vperm.xlu0 %2462, %v1707_v11  }
 0x29d   :  { %v4130_v40 = vpop.permute.xlu0 %1770  ;;  %v1642_v47 = vpop.permute.xlu1 %1641 }
 0x29e   :  { %v1706_v1 = vsub.f32 %v3934_v43, %v1642_v47 }
 0x2a0   :  { %1928 = vperm.xlu1 %2461, %v1706_v1  }
 0x2a1   :  { %v1648_v56 = vpop.permute.xlu0 %1647  ;;  %v4133_v54 = vpop.permute.xlu1 %1765 }
 0x2a2   :  { %v1709_v3 = vsub.f32 %v3966_v33, %v1648_v56 }
 0x2a4   :  { %1943 = vperm.xlu0 %2462, %v1709_v3  }
 0x2a5   :  { %v4136_v59 = vpop.permute.xlu0 %1780  ;;  %v1646_v49 = vpop.permute.xlu1 %1645 }
 0x2a6   :  { %v1708_v17 = vsub.f32 %v3958_v25, %v1646_v49 }
 0x2a8   :  { %1938 = vperm.xlu1 %2461, %v1708_v17  }
 0x2a9   :  { %v1652_v19 = vpop.permute.xlu0 %1651  ;;  %v4139_v38 = vpop.permute.xlu1 %1775 }
 0x2aa   :  { %v1711_v5 = vsub.f32 %v3990_v45, %v1652_v19 }
 0x2ac   :  { %1953 = vperm.xlu0 %2462, %v1711_v5  }
 0x2ad   :  { %v4142_v43 = vpop.permute.xlu0 %1790  ;;  %v1650_v36 = vpop.permute.xlu1 %1649 }
 0x2ae   :  { %v1710_v18 = vsub.f32 %v3982_v24, %v1650_v36 }
 0x2b0   :  { %1948 = vperm.xlu1 %2461, %v1710_v18  }
 0x2b1   :  { %v1656_v33 = vpop.permute.xlu0 %1655  ;;  %v4145_v50 = vpop.permute.xlu1 %1785 }
 0x2b2   :  { %v1713_v53 = vsub.f32 %v4014_v8, %v1656_v33 }
 0x2b4   :  { %1963 = vperm.xlu0 %2462, %v1713_v53  }
 0x2b5   :  { %v4148_v25 = vpop.permute.xlu0 %1800  ;;  %v1654_v14 = vpop.permute.xlu1 %1653 }
 0x2b6   :  { %v1712_v13 = vsub.f32 %v4006_v52, %v1654_v14  ;;  %v1844_v14 = vmul.f32 %v3533_v60, %v4106_v48 }
 0x2b8   :  { %1958 = vperm.xlu1 %2461, %v1712_v13  }
 0x2b9   :  { %v1660_v45 = vpop.permute.xlu0 %1659  ;;  %v4151_v42 = vpop.permute.xlu1 %1795 }
 0x2ba   :  { %v1715_v62 = vsub.f32 %v4038_v41, %v1660_v45 }
 0x2bc   :  { %1973 = vperm.xlu0 %2462, %v1715_v62  }
 0x2bd   :  { %v4154_v24 = vpop.permute.xlu0 %1810  ;;  %v1658_v0 = vpop.permute.xlu1 %1657 }
 0x2be   :  { %v1714_v11 = vsub.f32 %v4030_v61, %v1658_v0 }
 0x2c0   :  { %1968 = vperm.xlu1 %2461, %v1714_v11   ;;  %v1845_v11 = vmul.f32 %v3539_v63, %v4109_v7  ;;  %v1847_v63 = vmul.f32 %v3549_v9, %v4114_v58  ;;  %v1850_v9 = vmul.f32 %v3565_v37, %v4112_v27 }
 0x2c1   :  { %v1664_v8 = vpop.permute.xlu0 %1663  ;;  %v4157_v47 = vpop.permute.xlu1 %1805 }
 0x2c2   :  { %v1717_v1 = vsub.f32 %v4058_v20, %v1664_v8  ;;  %v1846_v8 = vmul.f32 %v3542_v4, %v4109_v7  ;;  %v1848_v4 = vmul.f32 %v3553_v22, %v4114_v58  ;;  %v1851_v7 = vmul.f32 %v3575_v26, %v4121_v46 }
 0x2c4   :  { %1983 = vperm.xlu0 %2462, %v1717_v1  }
 0x2c5   :  { %v1668_v52 = vpop.permute.xlu0 %1667  ;;  %v1662_v56 = vpop.permute.xlu1 %1661 }
 0x2c6   :  { %v1719_v3 = vsub.f32 %v4069_v10, %v1668_v52  ;;  %v1716_v49 = vsub.f32 %v4052_v32, %v1662_v56  ;;  %v1852_v56 = vmul.f32 %v3577_v28, %v4121_v46  ;;  %v1855_v28 = vmul.f32 %v3602_v30, %v4127_v55 }
 0x2c7   :  { %v1853_v30 = vmul.f32 %v3586_v35, %v4118_v2  ;;  %v1859_v35 = vmul.f32 %v3630_v34, %v4133_v54  ;;  %v1857_v34 = vmul.f32 %v3614_v29, %v4124_v31 }
 0x2c8   :  { %1993 = vperm.xlu0 %2462, %v1719_v3   ;;  %1978 = vperm.xlu1 %2461, %v1716_v49  }
 0x2c9   :  { %v1672_v41 = vpop.permute.xlu0 %1671  ;;  %v4162_v17 = vpop.permute.xlu1 %1815 }
 0x2ca   :  { %v1721_v61 = vsub.f32 %v4090_v15, %v1672_v41 }
 0x2cc   :  { %2003 = vperm.xlu0 %2462, %v1721_v61  }
 0x2cd   :  { %v1666_v19 = vpop.permute.xlu1 %1665 }
 0x2ce   :  { %v1718_v5 = vsub.f32 %v4075_v21, %v1666_v19  ;;  %v1843_v21 = vmul.f32 %v3531_v57, %v4106_v48 }
 0x2d0   :  { %1988 = vperm.xlu1 %2461, %v1718_v5  }
 0x2d1   :  { %v1670_v20 = vpop.permute.xlu1 %1669 }
 0x2d2   :  { %v1720_v36 = vsub.f32 %v4084_v12, %v1670_v20  ;;  %v1849_v20 = vmul.f32 %v3562_v16, %v4112_v27  ;;  %v1856_v27 = vmul.f32 %v3605_v6, %v4127_v55  ;;  %v1854_v6 = vmul.f32 %v3592_v39, %v4118_v2 }
 0x2d3   :  { %v1860_v39 = vmul.f32 %v3633_v23, %v4133_v54  ;;  %v1858_v23 = vmul.f32 %v3620_v51, %v4124_v31 }
 0x2d4   :  { %1998 = vperm.xlu1 %2461, %v1720_v36  }
 0x2d5   :  { %v1674_v18 = vpop.permute.xlu1 %1673  ;;  %v4168_v32 = vpop.permute.xlu0 %1820 }
 0x2d6   :  { %v1722_v10 = vsub.f32 %v4100_v44, %v1674_v18 }
 0x2d8   :  { %2008 = vperm.xlu1 %2461, %v1722_v10  }
 0x2d9   :  { %v4172_v53 = vpop.permute.xlu0 %1830 }
 0x2db   :  { %v4170_v33 = vpop.permute.xlu1 %1825 }
 0x2dd   :  { %v4180_v62 = vpop.permute.xlu0 %1840 }
 0x2df   :  { %v4174_v15 = vpop.permute.xlu1 %1835 }
 0x2fd   :  { %v1894_v12 = vpop.permute.xlu1 %1893 }
 0x2fe   :  { %v2011_v13 = vadd.f32 %v1894_v12, %v1843_v21  ;;  %v2012_v45 = vadd.f32 %v1894_v12, %v1844_v14 }
 0x300   :  { %v2059_v44 = vmax.f32 %v2011_v13, 0.0  ;;  %v2060_v0 = vmax.f32 %v2012_v45, 0.0 }
 0x302   :  { %2107 = vst [vmem:[%s4445_s3] sm:$0xff] %v2059_v44  ;;  %2108 = vst.msk [vmem:[%s4445_s3 + $0x8] sm:$0xff] %vm1122_vm1, %v2060_v0 }
 0x303   :  { %v1899_v57 = vpop.permute.xlu0 %1898 }
 0x304   :  { %v2013_v60 = vadd.f32 %v1899_v57, %v1845_v11  ;;  %v2014_v48 = vadd.f32 %v1899_v57, %v1846_v8 }
 0x306   :  { %v2061_v1 = vmax.f32 %v2013_v60, 0.0  ;;  %v2062_v52 = vmax.f32 %v2014_v48, 0.0 }
 0x308   :  { %2109 = vst [vmem:[%s4445_s3 + $0x10] sm:$0xff] %v2061_v1  ;;  %2110 = vst.msk [vmem:[%s4445_s3 + $0x18] sm:$0xff] %vm1122_vm1, %v2062_v52 }
 0x30b   :  { %v1914_v3 = vpop.permute.xlu0 %1913  ;;  %v1904_v49 = vpop.permute.xlu1 %1903 }
 0x30c   :  { %v2019_v41 = vadd.f32 %v1914_v3, %v1851_v7  ;;  %v2020_v61 = vadd.f32 %v1914_v3, %v1852_v56  ;;  %v2015_v19 = vadd.f32 %v1904_v49, %v1847_v63  ;;  %v2016_v5 = vadd.f32 %v1904_v49, %v1848_v4  ;;  %v4506_v4 = vld [vmem:[#allocation4_spill] sm:$0xff]  ;;  %v4507_v7 = vld [vmem:[#allocation5_spill] sm:$0xff] }
 0x30d   :  { %v1863_v29 = vmul.f32 %v4506_v4, %v4139_v38  ;;  %v1864_v51 = vmul.f32 %v4507_v7, %v4139_v38  ;;  %v4518_v4 = vld [vmem:[#allocation16_spill] sm:$0xff]  ;;  %v4519_v7 = vld [vmem:[#allocation17_spill] sm:$0xff] }
 0x30e   :  { %v2067_v36 = vmax.f32 %v2019_v41, 0.0  ;;  %v2068_v22 = vmax.f32 %v2020_v61, 0.0  ;;  %v2063_v58 = vmax.f32 %v2015_v19, 0.0  ;;  %v2064_v18 = vmax.f32 %v2016_v5, 0.0  ;;  %v4508_v61 = vld [vmem:[#allocation2_spill] sm:$0xff]  ;;  %v4509_v5 = vld [vmem:[#allocation3_spill] sm:$0xff] }
 0x30f   :  { %v1909_v26 = vpop.permute.xlu1 %1908  ;;  %v1861_v19 = vmul.f32 %v4508_v61, %v4130_v40  ;;  %v1862_v38 = vmul.f32 %v4509_v5, %v4130_v40 }
 0x310   :  { %2115 = vst [vmem:[%s4445_s3 + $0x40] sm:$0xff] %v2067_v36  ;;  %2116 = vst.msk [vmem:[%s4445_s3 + $0x48] sm:$0xff] %vm1122_vm1, %v2068_v22  ;;  %v2017_v16 = vadd.f32 %v1909_v26, %v1849_v20  ;;  %v2018_v37 = vadd.f32 %v1909_v26, %v1850_v9 }
 0x311   :  { %2111 = vst [vmem:[%s4445_s3 + $0x20] sm:$0xff] %v2063_v58  ;;  %2112 = vst.msk [vmem:[%s4445_s3 + $0x28] sm:$0xff] %vm1122_vm1, %v2064_v18  ;;  %v4510_v18 = vld [vmem:[#allocation8_spill] sm:$0xff] }
 0x312   :  { %v2065_v46 = vmax.f32 %v2017_v16, 0.0  ;;  %v2066_v10 = vmax.f32 %v2018_v37, 0.0  ;;  %v1867_v26 = vmul.f32 %v4510_v18, %v4145_v50  ;;  %v4511_v16 = vld [vmem:[#allocation9_spill] sm:$0xff] }
 0x313   :  { %v1924_v21 = vpop.permute.xlu0 %1923  ;;  %v1868_v40 = vmul.f32 %v4511_v16, %v4145_v50  ;;  %v4523_v18 = vld [vmem:[#allocation21_spill] sm:$0xff] }
 0x314   :  { %2113 = vst [vmem:[%s4445_s3 + $0x30] sm:$0xff] %v2065_v46  ;;  %2114 = vst.msk [vmem:[%s4445_s3 + $0x38] sm:$0xff] %vm1122_vm1, %v2066_v10  ;;  %v2023_v14 = vadd.f32 %v1924_v21, %v1855_v28  ;;  %v2024_v12 = vadd.f32 %v1924_v21, %v1856_v27  ;;  %v4512_v21 = vld [vmem:[#allocation6_spill] sm:$0xff] }
 0x316   :  { %v2071_v55 = vmax.f32 %v2023_v14, 0.0  ;;  %v2072_v13 = vmax.f32 %v2024_v12, 0.0  ;;  %v1865_v14 = vmul.f32 %v4512_v21, %v4136_v59  ;;  %v4513_v12 = vld [vmem:[#allocation7_spill] sm:$0xff]  ;;  %v4526_v21 = vld [vmem:[#allocation24_spill] sm:$0xff] }
 0x317   :  { %v1919_v45 = vpop.permute.xlu1 %1918  ;;  %v1866_v50 = vmul.f32 %v4513_v12, %v4136_v59  ;;  %v4527_v12 = vld [vmem:[#allocation25_spill] sm:$0xff] }
 0x318   :  { %2119 = vst [vmem:[%s4445_s3 + $0x60] sm:$0xff] %v2071_v55  ;;  %2120 = vst.msk [vmem:[%s4445_s3 + $0x68] sm:$0xff] %vm1122_vm1, %v2072_v13  ;;  %v2021_v44 = vadd.f32 %v1919_v45, %v1853_v30  ;;  %v2022_v0 = vadd.f32 %v1919_v45, %v1854_v6 }
 0x31a   :  { %v2069_v2 = vmax.f32 %v2021_v44, 0.0  ;;  %v2070_v11 = vmax.f32 %v2022_v0, 0.0  ;;  %v4514_v44 = vld [vmem:[#allocation12_spill] sm:$0xff] }
 0x31b   :  { %v1934_v8 = vpop.permute.xlu0 %1933  ;;  %v1871_v0 = vmul.f32 %v4514_v44, %v4151_v42 }
 0x31c   :  { %2117 = vst [vmem:[%s4445_s3 + $0x50] sm:$0xff] %v2069_v2  ;;  %2118 = vst.msk [vmem:[%s4445_s3 + $0x58] sm:$0xff] %vm1122_vm1, %v2070_v11  ;;  %v2027_v57 = vadd.f32 %v1934_v8, %v1859_v35  ;;  %v2028_v60 = vadd.f32 %v1934_v8, %v1860_v39  ;;  %v4515_v35 = vld [vmem:[#allocation13_spill] sm:$0xff] }
 0x31d   :  { %v1872_v59 = vmul.f32 %v4515_v35, %v4151_v42  ;;  %v4528_v35 = vld [vmem:[#allocation28_spill] sm:$0xff] }
 0x31e   :  { %v2075_v54 = vmax.f32 %v2027_v57, 0.0  ;;  %v2076_v48 = vmax.f32 %v2028_v60, 0.0  ;;  %v4516_v60 = vld [vmem:[#allocation10_spill] sm:$0xff] }
 0x31f   :  { %v1929_v1 = vpop.permute.xlu1 %1928 }
 0x320   :  { %2123 = vst [vmem:[%s4445_s3 + $0x80] sm:$0xff] %v2075_v54  ;;  %2124 = vst.msk [vmem:[%s4445_s3 + $0x88] sm:$0xff] %vm1122_vm1, %v2076_v48  ;;  %v2025_v52 = vadd.f32 %v1929_v1, %v1857_v34  ;;  %v2026_v63 = vadd.f32 %v1929_v1, %v1858_v23  ;;  %v1869_v34 = vmul.f32 %v4516_v60, %v4142_v43  ;;  %v4517_v23 = vld [vmem:[#allocation11_spill] sm:$0xff] }
 0x321   :  { %v1870_v42 = vmul.f32 %v4517_v23, %v4142_v43  ;;  %v1876_v43 = vmul.f32 %v4519_v7, %v4157_v47  ;;  %v4530_v23 = vld [vmem:[#allocation22_spill] sm:$0xff] }
 0x322   :  { %v2073_v31 = vmax.f32 %v2025_v52, 0.0  ;;  %v2074_v56 = vmax.f32 %v2026_v63, 0.0  ;;  %v4532_v7 = vld [vmem:[#allocation26_spill] sm:$0xff] }
 0x323   :  { %v1944_v3 = vpop.permute.xlu0 %1943 }
 0x324   :  { %2121 = vst [vmem:[%s4445_s3 + $0x70] sm:$0xff] %v2073_v31  ;;  %2122 = vst.msk [vmem:[%s4445_s3 + $0x78] sm:$0xff] %vm1122_vm1, %v2074_v56  ;;  %v2031_v49 = vadd.f32 %v1944_v3, %v1863_v29  ;;  %v2032_v41 = vadd.f32 %v1944_v3, %v1864_v51  ;;  %v1875_v29 = vmul.f32 %v4518_v4, %v4157_v47 }
 0x326   :  { %v2079_v20 = vmax.f32 %v2031_v49, 0.0  ;;  %v2080_v9 = vmax.f32 %v2032_v41, 0.0  ;;  %v4520_v41 = vld [vmem:[#allocation14_spill] sm:$0xff] }
 0x327   :  { %v1939_v36 = vpop.permute.xlu1 %1938  ;;  %v1873_v61 = vmul.f32 %v4520_v41, %v4148_v25 }
 0x328   :  { %2127 = vst [vmem:[%s4445_s3 + $0xa0] sm:$0xff] %v2079_v20  ;;  %2128 = vst.msk [vmem:[%s4445_s3 + $0xa8] sm:$0xff] %vm1122_vm1, %v2080_v9  ;;  %v2029_v22 = vadd.f32 %v1939_v36, %v1861_v19  ;;  %v2030_v58 = vadd.f32 %v1939_v36, %v1862_v38  ;;  %v4521_v19 = vld [vmem:[#allocation15_spill] sm:$0xff] }
 0x329   :  { %v1874_v47 = vmul.f32 %v4521_v19, %v4148_v25  ;;  %v1880_v25 = vmul.f32 %v4523_v18, %v4162_v17 }
 0x32a   :  { %v2077_v37 = vmax.f32 %v2029_v22, 0.0  ;;  %v2078_v28 = vmax.f32 %v2030_v58, 0.0  ;;  %v4522_v22 = vld [vmem:[#allocation20_spill] sm:$0xff] }
 0x32b   :  { %v1954_v27 = vpop.permute.xlu0 %1953  ;;  %v1879_v58 = vmul.f32 %v4522_v22, %v4162_v17 }
 0x32c   :  { %2125 = vst [vmem:[%s4445_s3 + $0x90] sm:$0xff] %v2077_v37  ;;  %2126 = vst.msk [vmem:[%s4445_s3 + $0x98] sm:$0xff] %vm1122_vm1, %v2078_v28  ;;  %v2035_v46 = vadd.f32 %v1954_v27, %v1867_v26  ;;  %v2036_v10 = vadd.f32 %v1954_v27, %v1868_v40  ;;  %v4524_v27 = vld [vmem:[#allocation18_spill] sm:$0xff] }
 0x32e   :  { %v2083_v30 = vmax.f32 %v2035_v46, 0.0  ;;  %v2084_v6 = vmax.f32 %v2036_v10, 0.0  ;;  %v1877_v46 = vmul.f32 %v4524_v27, %v4154_v24  ;;  %v4525_v10 = vld [vmem:[#allocation19_spill] sm:$0xff] }
 0x32f   :  { %v1949_v55 = vpop.permute.xlu1 %1948  ;;  %v1878_v17 = vmul.f32 %v4525_v10, %v4154_v24 }
 0x330   :  { %2131 = vst [vmem:[%s4445_s3 + $0xc0] sm:$0xff] %v2083_v30  ;;  %2132 = vst.msk [vmem:[%s4445_s3 + $0xc8] sm:$0xff] %vm1122_vm1, %v2084_v6  ;;  %v2033_v13 = vadd.f32 %v1949_v55, %v1865_v14  ;;  %v2034_v45 = vadd.f32 %v1949_v55, %v1866_v50  ;;  %v1883_v14 = vmul.f32 %v4526_v21, %v4170_v33 }
 0x331   :  { %v1884_v50 = vmul.f32 %v4527_v12, %v4170_v33  ;;  %v1887_v33 = vmul.f32 %v4528_v35, %v4174_v15 }
 0x332   :  { %v2081_v39 = vmax.f32 %v2033_v13, 0.0  ;;  %v2082_v2 = vmax.f32 %v2034_v45, 0.0 }
 0x333   :  { %v1964_v11 = vpop.permute.xlu0 %1963 }
 0x334   :  { %2129 = vst [vmem:[%s4445_s3 + $0xb0] sm:$0xff] %v2081_v39  ;;  %2130 = vst.msk [vmem:[%s4445_s3 + $0xb8] sm:$0xff] %vm1122_vm1, %v2082_v2  ;;  %v2039_v8 = vadd.f32 %v1964_v11, %v1871_v0  ;;  %v2040_v57 = vadd.f32 %v1964_v11, %v1872_v59  ;;  %v4529_v59 = vld [vmem:[#allocation29_spill] sm:$0xff] }
 0x335   :  { %v1888_v39 = vmul.f32 %v4529_v59, %v4174_v15 }
 0x336   :  { %v2087_v54 = vmax.f32 %v2039_v8, 0.0  ;;  %v2088_v48 = vmax.f32 %v2040_v57, 0.0 }
 0x337   :  { %v1959_v1 = vpop.permute.xlu1 %1958 }
 0x338   :  { %2135 = vst [vmem:[%s4445_s3 + $0xe0] sm:$0xff] %v2087_v54  ;;  %2136 = vst.msk [vmem:[%s4445_s3 + $0xe8] sm:$0xff] %vm1122_vm1, %v2088_v48  ;;  %v2037_v52 = vadd.f32 %v1959_v1, %v1869_v34  ;;  %v2038_v63 = vadd.f32 %v1959_v1, %v1870_v42  ;;  %v1881_v42 = vmul.f32 %v4530_v23, %v4168_v32  ;;  %v4531_v54 = vld [vmem:[#allocation23_spill] sm:$0xff] }
 0x339   :  { %v1882_v48 = vmul.f32 %v4531_v54, %v4168_v32 }
 0x33a   :  { %v2085_v51 = vmax.f32 %v2037_v52, 0.0  ;;  %v2086_v31 = vmax.f32 %v2038_v63, 0.0 }
 0x33b   :  { %v1974_v56 = vpop.permute.xlu0 %1973 }
 0x33c   :  { %2133 = vst [vmem:[%s4445_s3 + $0xd0] sm:$0xff] %v2085_v51  ;;  %2134 = vst.msk [vmem:[%s4445_s3 + $0xd8] sm:$0xff] %vm1122_vm1, %v2086_v31  ;;  %v2043_v3 = vadd.f32 %v1974_v56, %v1875_v29  ;;  %v2044_v49 = vadd.f32 %v1974_v56, %v1876_v43  ;;  %v1885_v43 = vmul.f32 %v4532_v7, %v4172_v53  ;;  %v4533_v51 = vld [vmem:[#allocation27_spill] sm:$0xff] }
 0x33d   :  { %v1886_v32 = vmul.f32 %v4533_v51, %v4172_v53 }
 0x33e   :  { %v2091_v5 = vmax.f32 %v2043_v3, 0.0  ;;  %v2092_v38 = vmax.f32 %v2044_v49, 0.0 }
 0x33f   :  { %v1969_v20 = vpop.permute.xlu1 %1968 }
 0x340   :  { %2139 = vst [vmem:[%s4445_s3 + $0x100] sm:$0xff] %v2091_v5  ;;  %2140 = vst.msk [vmem:[%s4445_s3 + $0x108] sm:$0xff] %vm1122_vm1, %v2092_v38  ;;  %v2041_v9 = vadd.f32 %v1969_v20, %v1873_v61  ;;  %v2042_v36 = vadd.f32 %v1969_v20, %v1874_v47  ;;  %v4534_v61 = vld [vmem:[#allocation30_spill] sm:$0xff]  ;;  %v4535_v47 = vld [vmem:[#allocation31_spill] sm:$0xff] }
 0x341   :  { %v1889_v19 = vmul.f32 %v4534_v61, %v4180_v62  ;;  %v1890_v53 = vmul.f32 %v4535_v47, %v4180_v62 }
 0x342   :  { %v2089_v26 = vmax.f32 %v2041_v9, 0.0  ;;  %v2090_v16 = vmax.f32 %v2042_v36, 0.0 }
 0x343   :  { %v1984_v40 = vpop.permute.xlu0 %1983 }
 0x344   :  { %2137 = vst [vmem:[%s4445_s3 + $0xf0] sm:$0xff] %v2089_v26  ;;  %2138 = vst.msk [vmem:[%s4445_s3 + $0xf8] sm:$0xff] %vm1122_vm1, %v2090_v16  ;;  %v2047_v37 = vadd.f32 %v1984_v40, %v1879_v58  ;;  %v2048_v28 = vadd.f32 %v1984_v40, %v1880_v25 }
 0x346   :  { %v2095_v30 = vmax.f32 %v2047_v37, 0.0  ;;  %v2096_v6 = vmax.f32 %v2048_v28, 0.0 }
 0x347   :  { %v1994_v55 = vpop.permute.xlu0 %1993  ;;  %v1979_v13 = vpop.permute.xlu1 %1978 }
 0x348   :  { %2143 = vst [vmem:[%s4445_s3 + $0x120] sm:$0xff] %v2095_v30  ;;  %2144 = vst.msk [vmem:[%s4445_s3 + $0x128] sm:$0xff] %vm1122_vm1, %v2096_v6  ;;  %v2051_v24 = vadd.f32 %v1994_v55, %v1883_v14  ;;  %v2052_v45 = vadd.f32 %v1994_v55, %v1884_v50  ;;  %v2045_v44 = vadd.f32 %v1979_v13, %v1877_v46 }
 0x349   :  { %v2046_v0 = vadd.f32 %v1979_v13, %v1878_v17 }
 0x34a   :  { %v2099_v2 = vmax.f32 %v2051_v24, 0.0  ;;  %v2100_v11 = vmax.f32 %v2052_v45, 0.0  ;;  %v2093_v8 = vmax.f32 %v2045_v44, 0.0 }
 0x34b   :  { %v2094_v57 = vmax.f32 %v2046_v0, 0.0  ;;  %v2004_v60 = vpop.permute.xlu0 %2003 }
 0x34c   :  { %2147 = vst [vmem:[%s4445_s3 + $0x140] sm:$0xff] %v2099_v2  ;;  %2148 = vst.msk [vmem:[%s4445_s3 + $0x148] sm:$0xff] %vm1122_vm1, %v2100_v11  ;;  %v2055_v15 = vadd.f32 %v2004_v60, %v1887_v33  ;;  %v2056_v34 = vadd.f32 %v2004_v60, %v1888_v39 }
 0x34d   :  { %2141 = vst [vmem:[%s4445_s3 + $0x110] sm:$0xff] %v2093_v8  ;;  %2142 = vst.msk [vmem:[%s4445_s3 + $0x118] sm:$0xff] %vm1122_vm1, %v2094_v57 }
 0x34e   :  { %v2103_v1 = vmax.f32 %v2055_v15, 0.0  ;;  %v2104_v52 = vmax.f32 %v2056_v34, 0.0 }
 0x34f   :  { %v1989_v63 = vpop.permute.xlu1 %1988 }
 0x350   :  { %2151 = vst [vmem:[%s4445_s3 + $0x160] sm:$0xff] %v2103_v1  ;;  %2152 = vst.msk [vmem:[%s4445_s3 + $0x168] sm:$0xff] %vm1122_vm1, %v2104_v52  ;;  %v2049_v4 = vadd.f32 %v1989_v63, %v1881_v42  ;;  %v2050_v29 = vadd.f32 %v1989_v63, %v1882_v48 }
 0x352   :  { %v2097_v31 = vmax.f32 %v2049_v4, 0.0  ;;  %v2098_v56 = vmax.f32 %v2050_v29, 0.0 }
 0x353   :  { %v1999_v3 = vpop.permute.xlu1 %1998 }
 0x354   :  { %2145 = vst [vmem:[%s4445_s3 + $0x130] sm:$0xff] %v2097_v31  ;;  %2146 = vst.msk [vmem:[%s4445_s3 + $0x138] sm:$0xff] %vm1122_vm1, %v2098_v56  ;;  %v2053_v49 = vadd.f32 %v1999_v3, %v1885_v43  ;;  %v2054_v41 = vadd.f32 %v1999_v3, %v1886_v32 }
 0x356   :  { %v2101_v5 = vmax.f32 %v2053_v49, 0.0  ;;  %v2102_v38 = vmax.f32 %v2054_v41, 0.0 }
 0x357   :  { %v2009_v20 = vpop.permute.xlu1 %2008 }
 0x358   :  { %2149 = vst [vmem:[%s4445_s3 + $0x150] sm:$0xff] %v2101_v5  ;;  %2150 = vst.msk [vmem:[%s4445_s3 + $0x158] sm:$0xff] %vm1122_vm1, %v2102_v38  ;;  %v2057_v9 = vadd.f32 %v2009_v20, %v1889_v19  ;;  %v2058_v36 = vadd.f32 %v2009_v20, %v1890_v53 }
 0x35a   :  { %v2105_v22 = vmax.f32 %v2057_v9, 0.0  ;;  %v2106_v58 = vmax.f32 %v2058_v36, 0.0 }
 0x35c   :  { %2153 = vst [vmem:[%s4445_s3 + $0x170] sm:$0xff] %v2105_v22  ;;  %2154 = vst.msk [vmem:[%s4445_s3 + $0x178] sm:$0xff] %vm1122_vm1, %v2106_v58 }

</bundles_post_ra>
